<compile_context>
chip_gen: v6e
topology: v6e:2x2x1
jax: 0.10.0
libtpu: 0.0.40
codegen_flags: <defaults>
</compile_context>

<pallas_src>
import functools
import math

import jax
import jax.numpy as jnp
from jax.experimental import pallas as pl
from jax.experimental.pallas import tpu as pltpu


_WEIGHT_ORDER = (
    "wqkv", "bqkv", "wo1", "bo1", "ln1_g", "ln1_b",
    "wq2", "bq2", "wkv2", "bkv2", "wo2", "bo2", "ln2_g", "ln2_b",
    "w1", "b1", "w2", "b2", "ln3_g", "ln3_b",
)


# ------------------------- fused whole-decoder kernel ------------------------

def _decoder_kernel(
    # activations / masks (block index depends on batch axis only)
    trg_ref, enc_ref, tbias_ref, sbias_ref,
    # per-layer stacked weights (block index depends on layer axis only)
    wqkv_ref, bqkv_ref, wo1_ref, bo1_ref, ln1g_ref, ln1b_ref,
    wq2_ref, bq2_ref, wkv2_ref, bkv2_ref, wo2_ref, bo2_ref, ln2g_ref, ln2b_ref,
    w1_ref, b1_ref, w2_ref, b2_ref, ln3g_ref, ln3b_ref,
    # fused, lane-padded output-head weights (constant)
    wh_ref, bh_ref,
    # outputs
    heads_ref, attn_ref,
    # scratch: activation resident in VMEM across the layer axis
    x_sc,
    *, n_heads, inv_scale):

    layer = pl.program_id(1)
    last_layer = pl.num_programs(1) - 1
    H = x_sc.shape[-1]
    Dh = H // n_heads

    @pl.when(layer == 0)
    def _():
        x_sc[...] = trg_ref[0]

    x = x_sc[...]                               # [L, H]  f32
    enc = enc_ref[0]                            # [S, H]  f32
    tb = tbias_ref[0].astype(jnp.float32)       # [L, L]  additive mask bias
    sb = sbias_ref[0].astype(jnp.float32)       # [L, S]  additive mask bias

    def matmul(a, w_ref):
        # bf16 operands on the MXU, f32 accumulate. Weight block is [1, K, N].
        return jnp.dot(a.astype(jnp.bfloat16), w_ref[0],
                       preferred_element_type=jnp.float32)

    def add_ln(a, res, g_ref, b_ref):
        h = a + res
        mean = jnp.mean(h, axis=-1, keepdims=True)
        var = jnp.mean(jnp.square(h - mean), axis=-1, keepdims=True)
        return (h - mean) * jax.lax.rsqrt(var + 1e-5) * g_ref[0] + b_ref[0]

    def attention(q, k, v, bias):
        # Per-head static lane slices; contexts kept in registers and concatenated once
        # into a lane-dense [L, H] operand (no VMEM scratch round-trip, no narrow stores).
        # TODO(synk): batch heads into a single [n_heads, L, Dh] einsum once the
        # in-kernel head-major relayout is worthwhile at production head dims.
        ctx_parts, probs = [], []
        for h in range(n_heads):
            lo = h * Dh
            qh = q[:, lo:lo + Dh].astype(jnp.bfloat16)
            kh = k[:, lo:lo + Dh].astype(jnp.bfloat16)
            vh = v[:, lo:lo + Dh].astype(jnp.bfloat16)
            e = jax.lax.dot_general(qh, kh, (((1,), (1,)), ((), ())),
                                    preferred_element_type=jnp.float32) * inv_scale
            e = e + bias
            e = e - jnp.max(e, axis=-1, keepdims=True)
            p = jnp.exp(e)
            p = p * pl.reciprocal(jnp.sum(p, axis=-1, keepdims=True), approx=True)
            probs.append(p)
            ctx_parts.append(jnp.dot(p.astype(jnp.bfloat16), vh,
                                     preferred_element_type=jnp.float32))
        return jnp.concatenate(ctx_parts, axis=-1), probs

    # ---- self attention (fused QKV projection) ----
    qkv = matmul(x, wqkv_ref) + bqkv_ref[0]
    sa, _ = attention(qkv[:, 0:H], qkv[:, H:2 * H], qkv[:, 2 * H:3 * H], tb)
    sa = matmul(sa, wo1_ref) + bo1_ref[0]
    x = add_ln(x, sa, ln1g_ref, ln1b_ref)

    # ---- encoder (cross) attention (fused KV projection) ----
    q = matmul(x, wq2_ref) + bq2_ref[0]
    kv = matmul(enc, wkv2_ref) + bkv2_ref[0]
    ca, cross_probs = attention(q, kv[:, 0:H], kv[:, H:2 * H], sb)
    ca = matmul(ca, wo2_ref) + bo2_ref[0]
    x = add_ln(x, ca, ln2g_ref, ln2b_ref)

    # ---- positionwise feedforward ----
    hdn = jnp.maximum(matmul(x, w1_ref) + b1_ref[0], 0.0)
    f = matmul(hdn, w2_ref) + b2_ref[0]
    x = add_ln(x, f, ln3g_ref, ln3b_ref)

    x_sc[...] = x

    @pl.when(layer == last_layer)
    def _():
        # Fused output heads (topo | mc | ol), lane-padded to a multiple of 128.
        heads_ref[0] = (jnp.dot(x.astype(jnp.bfloat16), wh_ref[...],
                                preferred_element_type=jnp.float32) + bh_ref[...])
        # Last layer's cross-attention probabilities (diagnostics output).
        for h in range(n_heads):
            attn_ref[0, h] = cross_probs[h]


def fused_decoder(trg_emb, enc_src, tbias, sbias, layers, wh, bh, n_heads):
    B, L, H = trg_emb.shape
    S = enc_src.shape[1]
    NL = layers["wqkv"].shape[0]
    NPAD = wh.shape[1]
    inv_scale = 1.0 / math.sqrt(H // n_heads)

    weights = [layers[k] for k in _WEIGHT_ORDER]

    in_specs = [
        pl.BlockSpec((1, L, H), lambda b, l: (b, 0, 0)),   # trg embedding
        pl.BlockSpec((1, S, H), lambda b, l: (b, 0, 0)),   # enc_src
        pl.BlockSpec((1, L, L), lambda b, l: (b, 0, 0)),   # tbias (bf16)
        pl.BlockSpec((1, L, S), lambda b, l: (b, 0, 0)),   # sbias (bf16)
    ]
    for wv in weights:                                     # stacked [NL, ...] weights
        in_specs.append(pl.BlockSpec((1,) + wv.shape[1:], lambda b, l: (l, 0, 0)))
    in_specs += [
        pl.BlockSpec(wh.shape, lambda b, l: (0, 0)),       # fused head weights
        pl.BlockSpec(bh.shape, lambda b, l: (0, 0)),       # fused head bias
    ]

    out_shape = (
        jax.ShapeDtypeStruct((B, L, NPAD), jnp.float32),
        jax.ShapeDtypeStruct((B, n_heads, L, S), jnp.float32),
    )
    out_specs = (
        pl.BlockSpec((1, L, NPAD), lambda b, l: (b, 0, 0)),
        pl.BlockSpec((1, n_heads, L, S), lambda b, l: (b, 0, 0, 0)),
    )

    kernel = functools.partial(_decoder_kernel, n_heads=n_heads, inv_scale=inv_scale)

    heads, attn = pl.pallas_call(
        kernel,
        grid=(B, NL),
        out_shape=out_shape,
        in_specs=in_specs,
        out_specs=out_specs,
        scratch_shapes=[pltpu.VMEM((L, H), jnp.float32)],
        compiler_params=pltpu.CompilerParams(
            dimension_semantics=("parallel", "arbitrary")),
    )(trg_emb, enc_src, tbias, sbias, *weights, wh, bh)
    return heads, attn


# ------------------------------ Decoder forward ------------------------------

def decoder_forward(params, trg_tokens, enc_src, trg_mask, src_mask, *, n_heads):
    """trg_tokens: [B, trg_len] int32; enc_src: [B, src_len, H];
    trg_mask: [B,1,trg_len,trg_len]; src_mask: [B,1,1,src_len]."""
    B, trg_len = trg_tokens.shape
    S = enc_src.shape[1]
    H = enc_src.shape[-1]
    scale = math.sqrt(H)

    vocab_e = params["vocab_embedding"]
    topo_e = params["topo_embedding"]
    mc_e = params["mc_embedding"]
    pos_e = params["pos_embedding"]

    # TODO(synk): embedding gathers stay in XLA (jnp.take); no small Pallas gather here.
    if trg_len == 1:
        tok_emb = jnp.take(vocab_e, trg_tokens[:, 0:1], axis=0)
    elif trg_len == 2:
        tok_emb = jnp.concatenate(
            [jnp.take(vocab_e, trg_tokens[:, 0:1], axis=0),
             jnp.take(topo_e, trg_tokens[:, 1:2], axis=0)], axis=1)
    elif trg_len == 3:
        tok_emb = jnp.concatenate(
            [jnp.take(vocab_e, trg_tokens[:, 0:1], axis=0),
             jnp.take(topo_e, trg_tokens[:, 1:2], axis=0),
             jnp.take(mc_e, trg_tokens[:, 2:3], axis=0)], axis=1)
    else:
        tok_emb = jnp.concatenate(
            [jnp.take(vocab_e, trg_tokens[:, 0:1], axis=0),
             jnp.take(topo_e, trg_tokens[:, 1:2], axis=0),
             jnp.take(mc_e, trg_tokens[:, 2:3], axis=0),
             jnp.take(vocab_e, trg_tokens[:, 3:], axis=0)], axis=1)

    pos_emb = jnp.broadcast_to(pos_e[:trg_len][None], (B, trg_len, H))
    trg = tok_emb * scale + pos_emb          # dropout == identity (inference)

    # Additive mask biases, computed ONCE for all layers; stored bf16 to halve DMA.
    tmask_f = trg_mask.reshape(B, trg_len, trg_len).astype(jnp.float32)
    tbias = ((tmask_f - 1.0) * 1e10).astype(jnp.bfloat16)
    smask_f = jnp.broadcast_to(src_mask.astype(jnp.float32),
                               (B, 1, trg_len, S)).reshape(B, trg_len, S)
    sbias = ((smask_f - 1.0) * 1e10).astype(jnp.bfloat16)

    # Fused, lane-padded output-head weights [H, topo+mc+out -> padded to x128].
    topo_dim = params["fc_topo_w"].shape[1]
    mc_dim = params["fc_mc_w"].shape[1]
    out_dim = params["fc_ol_w"].shape[1]
    ntot = topo_dim + mc_dim + out_dim
    npad = ((ntot + 127) // 128) * 128
    wh = jnp.concatenate([params["fc_topo_w"], params["fc_mc_w"],
                          params["fc_ol_w"]], axis=1)
    wh = jnp.pad(wh, ((0, 0), (0, npad - ntot))).astype(jnp.bfloat16)
    bh = jnp.concatenate([params["fc_topo_b"], params["fc_mc_b"],
                          params["fc_ol_b"]], axis=1)
    bh = jnp.pad(bh, ((0, 0), (0, npad - ntot))).astype(jnp.float32)

    heads, attention = fused_decoder(trg, enc_src, tbias, sbias,
                                     params["layers"], wh, bh, n_heads)

    output = {"output_topo": heads[:, 0, 0:topo_dim]}
    if trg_len >= 2:
        output["output_mc"] = heads[:, 1, topo_dim:topo_dim + mc_dim]
    if trg_len >= 3:
        output["output_ol"] = heads[:, 2:, topo_dim + mc_dim:ntot]
    output["attention"] = attention
    return output


# --------------------------- deterministic params ----------------------------

def init_params(key, *, output_dim, topo_dim, mc_dim, hid_dim, n_layers, pf_dim, max_len):
    keys = iter(jax.random.split(key, 512))
    f32 = jnp.float32

    def w(shape, s=0.02, dtype=jnp.bfloat16):
        return (jax.random.normal(next(keys), shape, f32) * s).astype(dtype)

    def sw(shape, s=0.02, dtype=jnp.bfloat16):       # stacked per-layer weight
        return (jax.random.normal(next(keys), (n_layers,) + shape, f32) * s).astype(dtype)

    def szeros(n):
        return jnp.zeros((n_layers, 1, n), f32)

    def sones(n):
        return jnp.ones((n_layers, 1, n), f32)

    layers = {
        # self attention: fused QKV
        "wqkv": sw((hid_dim, 3 * hid_dim)), "bqkv": szeros(3 * hid_dim),
        "wo1": sw((hid_dim, hid_dim)), "bo1": szeros(hid_dim),
        "ln1_g": sones(hid_dim), "ln1_b": szeros(hid_dim),
        # cross attention: separate Q, fused KV
        "wq2": sw((hid_dim, hid_dim)), "bq2": szeros(hid_dim),
        "wkv2": sw((hid_dim, 2 * hid_dim)), "bkv2": szeros(2 * hid_dim),
        "wo2": sw((hid_dim, hid_dim)), "bo2": szeros(hid_dim),
        "ln2_g": sones(hid_dim), "ln2_b": szeros(hid_dim),
        # feedforward
        "w1": sw((hid_dim, pf_dim)), "b1": szeros(pf_dim),
        "w2": sw((pf_dim, hid_dim)), "b2": szeros(hid_dim),
        "ln3_g": sones(hid_dim), "ln3_b": szeros(hid_dim),
    }

    return {
        "topo_embedding": w((topo_dim, hid_dim), 1.0, f32),
        "mc_embedding": w((mc_dim, hid_dim), 1.0, f32),
        "vocab_embedding": w((output_dim, hid_dim), 1.0, f32),
        "pos_embedding": w((max_len, hid_dim), 1.0, f32),
        "layers": layers,
        "fc_topo_w": w((hid_dim, topo_dim)), "fc_topo_b": jnp.zeros((1, topo_dim), f32),
        "fc_mc_w": w((hid_dim, mc_dim)), "fc_mc_b": jnp.zeros((1, mc_dim), f32),
        "fc_ol_w": w((hid_dim, output_dim)), "fc_ol_b": jnp.zeros((1, output_dim), f32),
    }


# ----------------------------------- main ------------------------------------

if __name__ == "__main__":
    B = 2
    trg_len = 4
    src_len = 8
    hid_dim = 32
    n_heads = 4
    pf_dim = 64
    n_layers = 2
    topo_dim = 10
    mc_dim = 6
    output_dim = 12
    max_len = 16

    root = jax.random.PRNGKey(0)
    k_par, k_enc, k_t0, k_t1, k_t2, k_t3 = jax.random.split(root, 6)

    params = init_params(
        k_par, output_dim=output_dim, topo_dim=topo_dim, mc_dim=mc_dim,
        hid_dim=hid_dim, n_layers=n_layers, pf_dim=pf_dim, max_len=max_len,
    )

    enc_src = jax.random.normal(k_enc, (B, src_len, hid_dim), jnp.float32)

    # tokens valid for each table at its position (pos0: vocab, pos1: topo, pos2: mc, pos3+: vocab)
    trg = jnp.concatenate([
        jax.random.randint(k_t0, (B, 1), 0, output_dim),
        jax.random.randint(k_t1, (B, 1), 0, topo_dim),
        jax.random.randint(k_t2, (B, 1), 0, mc_dim),
        jax.random.randint(k_t3, (B, trg_len - 3), 0, output_dim),
    ], axis=1).astype(jnp.int32)

    # causal target mask [B,1,trg_len,trg_len], all-ones source mask [B,1,1,src_len]
    causal = jnp.tril(jnp.ones((trg_len, trg_len), jnp.int32))
    trg_mask = jnp.broadcast_to(causal[None, None], (B, 1, trg_len, trg_len))
    src_mask = jnp.ones((B, 1, 1, src_len), jnp.int32)

    fwd = jax.jit(functools.partial(decoder_forward, n_heads=n_heads))
    out = fwd(params, trg, enc_src, trg_mask, src_mask)
    out = jax.tree_util.tree_map(jax.block_until_ready, out)

    assert out["output_topo"].shape == (B, topo_dim)
    assert out["output_mc"].shape == (B, mc_dim)
    assert out["output_ol"].shape == (B, trg_len - 2, output_dim)
    assert out["attention"].shape == (B, n_heads, trg_len, src_len)
    assert all(bool(jnp.all(jnp.isfinite(v))) for v in
               (out["output_topo"], out["output_mc"], out["output_ol"], out["attention"]))

    print("KERNEL_OK")
</pallas_src>

<mosaic_0001>
module attributes {stable_mosaic.version = 11 : i64} {
  func.func @_decoder_kernel(%arg0: i32, %arg1: i32, %arg2: memref<1x4x32xf32, #tpu.memory_space<vmem>>, %arg3: memref<1x8x32xf32, #tpu.memory_space<vmem>>, %arg4: memref<1x4x4xbf16, #tpu.memory_space<vmem>>, %arg5: memref<1x4x8xbf16, #tpu.memory_space<vmem>>, %arg6: memref<1x32x96xbf16, #tpu.memory_space<vmem>>, %arg7: memref<1x1x96xf32, #tpu.memory_space<vmem>>, %arg8: memref<1x32x32xbf16, #tpu.memory_space<vmem>>, %arg9: memref<1x1x32xf32, #tpu.memory_space<vmem>>, %arg10: memref<1x1x32xf32, #tpu.memory_space<vmem>>, %arg11: memref<1x1x32xf32, #tpu.memory_space<vmem>>, %arg12: memref<1x32x32xbf16, #tpu.memory_space<vmem>>, %arg13: memref<1x1x32xf32, #tpu.memory_space<vmem>>, %arg14: memref<1x32x64xbf16, #tpu.memory_space<vmem>>, %arg15: memref<1x1x64xf32, #tpu.memory_space<vmem>>, %arg16: memref<1x32x32xbf16, #tpu.memory_space<vmem>>, %arg17: memref<1x1x32xf32, #tpu.memory_space<vmem>>, %arg18: memref<1x1x32xf32, #tpu.memory_space<vmem>>, %arg19: memref<1x1x32xf32, #tpu.memory_space<vmem>>, %arg20: memref<1x32x64xbf16, #tpu.memory_space<vmem>>, %arg21: memref<1x1x64xf32, #tpu.memory_space<vmem>>, %arg22: memref<1x64x32xbf16, #tpu.memory_space<vmem>>, %arg23: memref<1x1x32xf32, #tpu.memory_space<vmem>>, %arg24: memref<1x1x32xf32, #tpu.memory_space<vmem>>, %arg25: memref<1x1x32xf32, #tpu.memory_space<vmem>>, %arg26: memref<32x128xbf16, #tpu.memory_space<vmem>>, %arg27: memref<1x128xf32, #tpu.memory_space<vmem>>, %arg28: memref<1x4x128xf32, #tpu.memory_space<vmem>>, %arg29: memref<1x4x4x8xf32, #tpu.memory_space<vmem>>, %arg30: memref<4x32xf32, #tpu.memory_space<vmem>>) attributes {dimension_semantics = [#tpu.dimension_semantics<parallel>, #tpu.dimension_semantics<arbitrary>], iteration_bounds = array<i64: 2, 2>, scalar_prefetch = 0 : i64, scratch_operands = 1 : i64, tpu.core_type = #tpu.core_type<tc>, window_params = [{transform_indices = @transform_0, window_bounds = array<i64: 1, 4, 32>}, {transform_indices = @transform_1, window_bounds = array<i64: 1, 8, 32>}, {transform_indices = @transform_2, window_bounds = array<i64: 1, 4, 4>}, {transform_indices = @transform_3, window_bounds = array<i64: 1, 4, 8>}, {transform_indices = @transform_4, window_bounds = array<i64: 1, 32, 96>}, {transform_indices = @transform_5, window_bounds = array<i64: 1, 1, 96>}, {transform_indices = @transform_6, window_bounds = array<i64: 1, 32, 32>}, {transform_indices = @transform_7, window_bounds = array<i64: 1, 1, 32>}, {transform_indices = @transform_8, window_bounds = array<i64: 1, 1, 32>}, {transform_indices = @transform_9, window_bounds = array<i64: 1, 1, 32>}, {transform_indices = @transform_10, window_bounds = array<i64: 1, 32, 32>}, {transform_indices = @transform_11, window_bounds = array<i64: 1, 1, 32>}, {transform_indices = @transform_12, window_bounds = array<i64: 1, 32, 64>}, {transform_indices = @transform_13, window_bounds = array<i64: 1, 1, 64>}, {transform_indices = @transform_14, window_bounds = array<i64: 1, 32, 32>}, {transform_indices = @transform_15, window_bounds = array<i64: 1, 1, 32>}, {transform_indices = @transform_16, window_bounds = array<i64: 1, 1, 32>}, {transform_indices = @transform_17, window_bounds = array<i64: 1, 1, 32>}, {transform_indices = @transform_18, window_bounds = array<i64: 1, 32, 64>}, {transform_indices = @transform_19, window_bounds = array<i64: 1, 1, 64>}, {transform_indices = @transform_20, window_bounds = array<i64: 1, 64, 32>}, {transform_indices = @transform_21, window_bounds = array<i64: 1, 1, 32>}, {transform_indices = @transform_22, window_bounds = array<i64: 1, 1, 32>}, {transform_indices = @transform_23, window_bounds = array<i64: 1, 1, 32>}, {pipeline_mode = #tpu.pipeline_mode<synchronous>, transform_indices = @transform_24, window_bounds = array<i64: 32, 128>}, {pipeline_mode = #tpu.pipeline_mode<synchronous>, transform_indices = @transform_25, window_bounds = array<i64: 1, 128>}, {transform_indices = @transform_26, window_bounds = array<i64: 1, 4, 128>}, {transform_indices = @transform_27, window_bounds = array<i64: 1, 4, 4, 8>}]} {
    %c0_i32 = arith.constant 0 : i32
    %0 = arith.cmpi eq, %arg1, %c0_i32 : i32
    %1 = arith.extui %0 : i1 to i32
    %c0_i32_0 = arith.constant 0 : i32
    %2 = arith.cmpi ne, %1, %c0_i32_0 : i32
    scf.if %2 {
      %c0_136 = arith.constant 0 : index
      %c0_137 = arith.constant 0 : index
      %c0_138 = arith.constant 0 : index
      %338 = vector.load %arg2[%c0_136, %c0_137, %c0_138] : memref<1x4x32xf32, #tpu.memory_space<vmem>>, vector<1x4x32xf32>
      %339 = vector.shape_cast %338 : vector<1x4x32xf32> to vector<4x32xf32>
      %c0_139 = arith.constant 0 : index
      %c0_140 = arith.constant 0 : index
      %340 = vector.load %arg30[%c0_139, %c0_140] : memref<4x32xf32, #tpu.memory_space<vmem>>, vector<4x32xf32>
      tpu.vector_store %arg30[%c0_139, %c0_140], %339 {strides = array<i32>} : memref<4x32xf32, #tpu.memory_space<vmem>>, vector<4x32xf32>,
    } else {
    }
    %c0 = arith.constant 0 : index
    %c0_1 = arith.constant 0 : index
    %3 = vector.load %arg30[%c0, %c0_1] : memref<4x32xf32, #tpu.memory_space<vmem>>, vector<4x32xf32>
    %c0_2 = arith.constant 0 : index
    %c0_3 = arith.constant 0 : index
    %c0_4 = arith.constant 0 : index
    %4 = vector.load %arg3[%c0_2, %c0_3, %c0_4] : memref<1x8x32xf32, #tpu.memory_space<vmem>>, vector<1x8x32xf32>
    %5 = vector.shape_cast %4 : vector<1x8x32xf32> to vector<8x32xf32>
    %c0_5 = arith.constant 0 : index
    %c0_6 = arith.constant 0 : index
    %c0_7 = arith.constant 0 : index
    %6 = vector.load %arg4[%c0_5, %c0_6, %c0_7] : memref<1x4x4xbf16, #tpu.memory_space<vmem>>, vector<1x4x4xbf16>
    %7 = vector.shape_cast %6 : vector<1x4x4xbf16> to vector<4x4xbf16>
    %8 = arith.extf %7 : vector<4x4xbf16> to vector<4x4xf32>
    %c0_8 = arith.constant 0 : index
    %c0_9 = arith.constant 0 : index
    %c0_10 = arith.constant 0 : index
    %9 = vector.load %arg5[%c0_8, %c0_9, %c0_10] : memref<1x4x8xbf16, #tpu.memory_space<vmem>>, vector<1x4x8xbf16>
    %10 = vector.shape_cast %9 : vector<1x4x8xbf16> to vector<4x8xbf16>
    %11 = arith.extf %10 : vector<4x8xbf16> to vector<4x8xf32>
    %12 = arith.truncf %3 : vector<4x32xf32> to vector<4x32xbf16>
    %c0_11 = arith.constant 0 : index
    %c0_12 = arith.constant 0 : index
    %c0_13 = arith.constant 0 : index
    %13 = vector.load %arg6[%c0_11, %c0_12, %c0_13] : memref<1x32x96xbf16, #tpu.memory_space<vmem>>, vector<1x32x96xbf16>
    %14 = vector.shape_cast %13 : vector<1x32x96xbf16> to vector<32x96xbf16>
    %cst = arith.constant dense<0.000000e+00> : vector<4x96xf32>
    %15 = tpu.matmul %12, %14, %cst {dimension_numbers = #tpu.dot_dimension_numbers<[1], [0], [0], [1], [0, 0, 1, 1], [], []>} : vector<4x32xbf16>, vector<32x96xbf16>, vector<4x96xf32> -> vector<4x96xf32>
    %c0_14 = arith.constant 0 : index
    %c0_15 = arith.constant 0 : index
    %c0_16 = arith.constant 0 : index
    %16 = vector.load %arg7[%c0_14, %c0_15, %c0_16] : memref<1x1x96xf32, #tpu.memory_space<vmem>>, vector<1x1x96xf32>
    %17 = vector.shape_cast %16 : vector<1x1x96xf32> to vector<1x96xf32>
    %18 = vector.broadcast %17 : vector<1x96xf32> to vector<4x96xf32>
    %19 = arith.addf %15, %18 : vector<4x96xf32>
    %20 = vector.extract_strided_slice %19 {offsets = [0, 0], sizes = [4, 32], strides = [1, 1]} : vector<4x96xf32> to vector<4x32xf32>
    %21 = vector.extract_strided_slice %19 {offsets = [0, 32], sizes = [4, 32], strides = [1, 1]} : vector<4x96xf32> to vector<4x32xf32>
    %22 = vector.extract_strided_slice %19 {offsets = [0, 64], sizes = [4, 32], strides = [1, 1]} : vector<4x96xf32> to vector<4x32xf32>
    %23 = vector.extract_strided_slice %20 {offsets = [0, 0], sizes = [4, 8], strides = [1, 1]} : vector<4x32xf32> to vector<4x8xf32>
    %24 = arith.truncf %23 : vector<4x8xf32> to vector<4x8xbf16>
    %25 = vector.extract_strided_slice %21 {offsets = [0, 0], sizes = [4, 8], strides = [1, 1]} : vector<4x32xf32> to vector<4x8xf32>
    %26 = arith.truncf %25 : vector<4x8xf32> to vector<4x8xbf16>
    %27 = vector.extract_strided_slice %22 {offsets = [0, 0], sizes = [4, 8], strides = [1, 1]} : vector<4x32xf32> to vector<4x8xf32>
    %28 = arith.truncf %27 : vector<4x8xf32> to vector<4x8xbf16>
    %cst_17 = arith.constant dense<0.000000e+00> : vector<4x4xf32>
    %29 = tpu.matmul %24, %26, %cst_17 {dimension_numbers = #tpu.dot_dimension_numbers<[1], [1], [0], [0], [0, 0, 1, 0], [], []>} : vector<4x8xbf16>, vector<4x8xbf16>, vector<4x4xf32> -> vector<4x4xf32>
    %cst_18 = arith.constant 0.353553385 : f32
    %30 = vector.broadcast %cst_18 : f32 to vector<4x4xf32>
    %31 = arith.mulf %29, %30 : vector<4x4xf32>
    %32 = arith.addf %31, %8 : vector<4x4xf32>
    %cst_19 = arith.constant dense<0xFF800000> : vector<4xf32>
    %33 = vector.multi_reduction <maximumf>, %32, %cst_19 [1] : vector<4x4xf32> to vector<4xf32>
    %34 = vector.shape_cast %33 : vector<4xf32> to vector<4x1xf32>
    %35 = vector.broadcast %34 : vector<4x1xf32> to vector<4x4xf32>
    %36 = arith.subf %32, %35 : vector<4x4xf32>
    %37 = math.exp %36 : vector<4x4xf32>
    %cst_20 = arith.constant dense<0.000000e+00> : vector<4xf32>
    %38 = vector.multi_reduction <add>, %37, %cst_20 [1] : vector<4x4xf32> to vector<4xf32>
    %39 = vector.shape_cast %38 : vector<4xf32> to vector<4x1xf32>
    %40 = tpu.reciprocal %39 {approx = true} : vector<4x1xf32> -> vector<4x1xf32>
    %41 = vector.broadcast %40 : vector<4x1xf32> to vector<4x4xf32>
    %42 = arith.mulf %37, %41 : vector<4x4xf32>
    %43 = arith.truncf %42 : vector<4x4xf32> to vector<4x4xbf16>
    %cst_21 = arith.constant dense<0.000000e+00> : vector<4x8xf32>
    %44 = tpu.matmul %43, %28, %cst_21 {dimension_numbers = #tpu.dot_dimension_numbers<[1], [0], [0], [1], [0, 0, 1, 1], [], []>} : vector<4x4xbf16>, vector<4x8xbf16>, vector<4x8xf32> -> vector<4x8xf32>
    %45 = vector.extract_strided_slice %20 {offsets = [0, 8], sizes = [4, 8], strides = [1, 1]} : vector<4x32xf32> to vector<4x8xf32>
    %46 = arith.truncf %45 : vector<4x8xf32> to vector<4x8xbf16>
    %47 = vector.extract_strided_slice %21 {offsets = [0, 8], sizes = [4, 8], strides = [1, 1]} : vector<4x32xf32> to vector<4x8xf32>
    %48 = arith.truncf %47 : vector<4x8xf32> to vector<4x8xbf16>
    %49 = vector.extract_strided_slice %22 {offsets = [0, 8], sizes = [4, 8], strides = [1, 1]} : vector<4x32xf32> to vector<4x8xf32>
    %50 = arith.truncf %49 : vector<4x8xf32> to vector<4x8xbf16>
    %cst_22 = arith.constant dense<0.000000e+00> : vector<4x4xf32>
    %51 = tpu.matmul %46, %48, %cst_22 {dimension_numbers = #tpu.dot_dimension_numbers<[1], [1], [0], [0], [0, 0, 1, 0], [], []>} : vector<4x8xbf16>, vector<4x8xbf16>, vector<4x4xf32> -> vector<4x4xf32>
    %cst_23 = arith.constant 0.353553385 : f32
    %52 = vector.broadcast %cst_23 : f32 to vector<4x4xf32>
    %53 = arith.mulf %51, %52 : vector<4x4xf32>
    %54 = arith.addf %53, %8 : vector<4x4xf32>
    %cst_24 = arith.constant dense<0xFF800000> : vector<4xf32>
    %55 = vector.multi_reduction <maximumf>, %54, %cst_24 [1] : vector<4x4xf32> to vector<4xf32>
    %56 = vector.shape_cast %55 : vector<4xf32> to vector<4x1xf32>
    %57 = vector.broadcast %56 : vector<4x1xf32> to vector<4x4xf32>
    %58 = arith.subf %54, %57 : vector<4x4xf32>
    %59 = math.exp %58 : vector<4x4xf32>
    %cst_25 = arith.constant dense<0.000000e+00> : vector<4xf32>
    %60 = vector.multi_reduction <add>, %59, %cst_25 [1] : vector<4x4xf32> to vector<4xf32>
    %61 = vector.shape_cast %60 : vector<4xf32> to vector<4x1xf32>
    %62 = tpu.reciprocal %61 {approx = true} : vector<4x1xf32> -> vector<4x1xf32>
    %63 = vector.broadcast %62 : vector<4x1xf32> to vector<4x4xf32>
    %64 = arith.mulf %59, %63 : vector<4x4xf32>
    %65 = arith.truncf %64 : vector<4x4xf32> to vector<4x4xbf16>
    %cst_26 = arith.constant dense<0.000000e+00> : vector<4x8xf32>
    %66 = tpu.matmul %65, %50, %cst_26 {dimension_numbers = #tpu.dot_dimension_numbers<[1], [0], [0], [1], [0, 0, 1, 1], [], []>} : vector<4x4xbf16>, vector<4x8xbf16>, vector<4x8xf32> -> vector<4x8xf32>
    %67 = vector.extract_strided_slice %20 {offsets = [0, 16], sizes = [4, 8], strides = [1, 1]} : vector<4x32xf32> to vector<4x8xf32>
    %68 = arith.truncf %67 : vector<4x8xf32> to vector<4x8xbf16>
    %69 = vector.extract_strided_slice %21 {offsets = [0, 16], sizes = [4, 8], strides = [1, 1]} : vector<4x32xf32> to vector<4x8xf32>
    %70 = arith.truncf %69 : vector<4x8xf32> to vector<4x8xbf16>
    %71 = vector.extract_strided_slice %22 {offsets = [0, 16], sizes = [4, 8], strides = [1, 1]} : vector<4x32xf32> to vector<4x8xf32>
    %72 = arith.truncf %71 : vector<4x8xf32> to vector<4x8xbf16>
    %cst_27 = arith.constant dense<0.000000e+00> : vector<4x4xf32>
    %73 = tpu.matmul %68, %70, %cst_27 {dimension_numbers = #tpu.dot_dimension_numbers<[1], [1], [0], [0], [0, 0, 1, 0], [], []>} : vector<4x8xbf16>, vector<4x8xbf16>, vector<4x4xf32> -> vector<4x4xf32>
    %cst_28 = arith.constant 0.353553385 : f32
    %74 = vector.broadcast %cst_28 : f32 to vector<4x4xf32>
    %75 = arith.mulf %73, %74 : vector<4x4xf32>
    %76 = arith.addf %75, %8 : vector<4x4xf32>
    %cst_29 = arith.constant dense<0xFF800000> : vector<4xf32>
    %77 = vector.multi_reduction <maximumf>, %76, %cst_29 [1] : vector<4x4xf32> to vector<4xf32>
    %78 = vector.shape_cast %77 : vector<4xf32> to vector<4x1xf32>
    %79 = vector.broadcast %78 : vector<4x1xf32> to vector<4x4xf32>
    %80 = arith.subf %76, %79 : vector<4x4xf32>
    %81 = math.exp %80 : vector<4x4xf32>
    %cst_30 = arith.constant dense<0.000000e+00> : vector<4xf32>
    %82 = vector.multi_reduction <add>, %81, %cst_30 [1] : vector<4x4xf32> to vector<4xf32>
    %83 = vector.shape_cast %82 : vector<4xf32> to vector<4x1xf32>
    %84 = tpu.reciprocal %83 {approx = true} : vector<4x1xf32> -> vector<4x1xf32>
    %85 = vector.broadcast %84 : vector<4x1xf32> to vector<4x4xf32>
    %86 = arith.mulf %81, %85 : vector<4x4xf32>
    %87 = arith.truncf %86 : vector<4x4xf32> to vector<4x4xbf16>
    %cst_31 = arith.constant dense<0.000000e+00> : vector<4x8xf32>
    %88 = tpu.matmul %87, %72, %cst_31 {dimension_numbers = #tpu.dot_dimension_numbers<[1], [0], [0], [1], [0, 0, 1, 1], [], []>} : vector<4x4xbf16>, vector<4x8xbf16>, vector<4x8xf32> -> vector<4x8xf32>
    %89 = vector.extract_strided_slice %20 {offsets = [0, 24], sizes = [4, 8], strides = [1, 1]} : vector<4x32xf32> to vector<4x8xf32>
    %90 = arith.truncf %89 : vector<4x8xf32> to vector<4x8xbf16>
    %91 = vector.extract_strided_slice %21 {offsets = [0, 24], sizes = [4, 8], strides = [1, 1]} : vector<4x32xf32> to vector<4x8xf32>
    %92 = arith.truncf %91 : vector<4x8xf32> to vector<4x8xbf16>
    %93 = vector.extract_strided_slice %22 {offsets = [0, 24], sizes = [4, 8], strides = [1, 1]} : vector<4x32xf32> to vector<4x8xf32>
    %94 = arith.truncf %93 : vector<4x8xf32> to vector<4x8xbf16>
    %cst_32 = arith.constant dense<0.000000e+00> : vector<4x4xf32>
    %95 = tpu.matmul %90, %92, %cst_32 {dimension_numbers = #tpu.dot_dimension_numbers<[1], [1], [0], [0], [0, 0, 1, 0], [], []>} : vector<4x8xbf16>, vector<4x8xbf16>, vector<4x4xf32> -> vector<4x4xf32>
    %cst_33 = arith.constant 0.353553385 : f32
    %96 = vector.broadcast %cst_33 : f32 to vector<4x4xf32>
    %97 = arith.mulf %95, %96 : vector<4x4xf32>
    %98 = arith.addf %97, %8 : vector<4x4xf32>
    %cst_34 = arith.constant dense<0xFF800000> : vector<4xf32>
    %99 = vector.multi_reduction <maximumf>, %98, %cst_34 [1] : vector<4x4xf32> to vector<4xf32>
    %100 = vector.shape_cast %99 : vector<4xf32> to vector<4x1xf32>
    %101 = vector.broadcast %100 : vector<4x1xf32> to vector<4x4xf32>
    %102 = arith.subf %98, %101 : vector<4x4xf32>
    %103 = math.exp %102 : vector<4x4xf32>
    %cst_35 = arith.constant dense<0.000000e+00> : vector<4xf32>
    %104 = vector.multi_reduction <add>, %103, %cst_35 [1] : vector<4x4xf32> to vector<4xf32>
    %105 = vector.shape_cast %104 : vector<4xf32> to vector<4x1xf32>
    %106 = tpu.reciprocal %105 {approx = true} : vector<4x1xf32> -> vector<4x1xf32>
    %107 = vector.broadcast %106 : vector<4x1xf32> to vector<4x4xf32>
    %108 = arith.mulf %103, %107 : vector<4x4xf32>
    %109 = arith.truncf %108 : vector<4x4xf32> to vector<4x4xbf16>
    %cst_36 = arith.constant dense<0.000000e+00> : vector<4x8xf32>
    %110 = tpu.matmul %109, %94, %cst_36 {dimension_numbers = #tpu.dot_dimension_numbers<[1], [0], [0], [1], [0, 0, 1, 1], [], []>} : vector<4x4xbf16>, vector<4x8xbf16>, vector<4x8xf32> -> vector<4x8xf32>
    %111 = tpu.concatenate %44, %66, %88, %110 in 1 : vector<4x8xf32>, vector<4x8xf32>, vector<4x8xf32>, vector<4x8xf32> -> vector<4x32xf32>
    %112 = arith.truncf %111 : vector<4x32xf32> to vector<4x32xbf16>
    %c0_37 = arith.constant 0 : index
    %c0_38 = arith.constant 0 : index
    %c0_39 = arith.constant 0 : index
    %113 = vector.load %arg8[%c0_37, %c0_38, %c0_39] : memref<1x32x32xbf16, #tpu.memory_space<vmem>>, vector<1x32x32xbf16>
    %114 = vector.shape_cast %113 : vector<1x32x32xbf16> to vector<32x32xbf16>
    %cst_40 = arith.constant dense<0.000000e+00> : vector<4x32xf32>
    %115 = tpu.matmul %112, %114, %cst_40 {dimension_numbers = #tpu.dot_dimension_numbers<[1], [0], [0], [1], [0, 0, 1, 1], [], []>} : vector<4x32xbf16>, vector<32x32xbf16>, vector<4x32xf32> -> vector<4x32xf32>
    %c0_41 = arith.constant 0 : index
    %c0_42 = arith.constant 0 : index
    %c0_43 = arith.constant 0 : index
    %116 = vector.load %arg9[%c0_41, %c0_42, %c0_43] : memref<1x1x32xf32, #tpu.memory_space<vmem>>, vector<1x1x32xf32>
    %117 = vector.shape_cast %116 : vector<1x1x32xf32> to vector<1x32xf32>
    %118 = vector.broadcast %117 : vector<1x32xf32> to vector<4x32xf32>
    %119 = arith.addf %115, %118 : vector<4x32xf32>
    %120 = arith.addf %3, %119 : vector<4x32xf32>
    %cst_44 = arith.constant dense<0.000000e+00> : vector<4xf32>
    %121 = vector.multi_reduction <add>, %120, %cst_44 [1] : vector<4x32xf32> to vector<4xf32>
    %122 = vector.shape_cast %121 : vector<4xf32> to vector<4x1xf32>
    %cst_45 = arith.constant 3.200000e+01 : f32
    %123 = vector.broadcast %cst_45 : f32 to vector<4x1xf32>
    %124 = arith.divf %122, %123 : vector<4x1xf32>
    %125 = vector.broadcast %124 : vector<4x1xf32> to vector<4x32xf32>
    %126 = arith.subf %120, %125 : vector<4x32xf32>
    %127 = arith.mulf %126, %126 : vector<4x32xf32>
    %cst_46 = arith.constant dense<0.000000e+00> : vector<4xf32>
    %128 = vector.multi_reduction <add>, %127, %cst_46 [1] : vector<4x32xf32> to vector<4xf32>
    %129 = vector.shape_cast %128 : vector<4xf32> to vector<4x1xf32>
    %cst_47 = arith.constant 3.200000e+01 : f32
    %130 = vector.broadcast %cst_47 : f32 to vector<4x1xf32>
    %131 = arith.divf %129, %130 : vector<4x1xf32>
    %132 = vector.broadcast %124 : vector<4x1xf32> to vector<4x32xf32>
    %133 = arith.subf %120, %132 : vector<4x32xf32>
    %cst_48 = arith.constant 9.99999974E-6 : f32
    %134 = vector.broadcast %cst_48 : f32 to vector<4x1xf32>
    %135 = arith.addf %131, %134 : vector<4x1xf32>
    %136 = math.rsqrt %135 : vector<4x1xf32>
    %137 = vector.broadcast %136 : vector<4x1xf32> to vector<4x32xf32>
    %138 = arith.mulf %133, %137 : vector<4x32xf32>
    %c0_49 = arith.constant 0 : index
    %c0_50 = arith.constant 0 : index
    %c0_51 = arith.constant 0 : index
    %139 = vector.load %arg10[%c0_49, %c0_50, %c0_51] : memref<1x1x32xf32, #tpu.memory_space<vmem>>, vector<1x1x32xf32>
    %140 = vector.shape_cast %139 : vector<1x1x32xf32> to vector<1x32xf32>
    %141 = vector.broadcast %140 : vector<1x32xf32> to vector<4x32xf32>
    %142 = arith.mulf %138, %141 : vector<4x32xf32>
    %c0_52 = arith.constant 0 : index
    %c0_53 = arith.constant 0 : index
    %c0_54 = arith.constant 0 : index
    %143 = vector.load %arg11[%c0_52, %c0_53, %c0_54] : memref<1x1x32xf32, #tpu.memory_space<vmem>>, vector<1x1x32xf32>
    %144 = vector.shape_cast %143 : vector<1x1x32xf32> to vector<1x32xf32>
    %145 = vector.broadcast %144 : vector<1x32xf32> to vector<4x32xf32>
    %146 = arith.addf %142, %145 : vector<4x32xf32>
    %147 = arith.truncf %146 : vector<4x32xf32> to vector<4x32xbf16>
    %c0_55 = arith.constant 0 : index
    %c0_56 = arith.constant 0 : index
    %c0_57 = arith.constant 0 : index
    %148 = vector.load %arg12[%c0_55, %c0_56, %c0_57] : memref<1x32x32xbf16, #tpu.memory_space<vmem>>, vector<1x32x32xbf16>
    %149 = vector.shape_cast %148 : vector<1x32x32xbf16> to vector<32x32xbf16>
    %cst_58 = arith.constant dense<0.000000e+00> : vector<4x32xf32>
    %150 = tpu.matmul %147, %149, %cst_58 {dimension_numbers = #tpu.dot_dimension_numbers<[1], [0], [0], [1], [0, 0, 1, 1], [], []>} : vector<4x32xbf16>, vector<32x32xbf16>, vector<4x32xf32> -> vector<4x32xf32>
    %c0_59 = arith.constant 0 : index
    %c0_60 = arith.constant 0 : index
    %c0_61 = arith.constant 0 : index
    %151 = vector.load %arg13[%c0_59, %c0_60, %c0_61] : memref<1x1x32xf32, #tpu.memory_space<vmem>>, vector<1x1x32xf32>
    %152 = vector.shape_cast %151 : vector<1x1x32xf32> to vector<1x32xf32>
    %153 = vector.broadcast %152 : vector<1x32xf32> to vector<4x32xf32>
    %154 = arith.addf %150, %153 : vector<4x32xf32>
    %155 = arith.truncf %5 : vector<8x32xf32> to vector<8x32xbf16>
    %c0_62 = arith.constant 0 : index
    %c0_63 = arith.constant 0 : index
    %c0_64 = arith.constant 0 : index
    %156 = vector.load %arg14[%c0_62, %c0_63, %c0_64] : memref<1x32x64xbf16, #tpu.memory_space<vmem>>, vector<1x32x64xbf16>
    %157 = vector.shape_cast %156 : vector<1x32x64xbf16> to vector<32x64xbf16>
    %cst_65 = arith.constant dense<0.000000e+00> : vector<8x64xf32>
    %158 = tpu.matmul %155, %157, %cst_65 {dimension_numbers = #tpu.dot_dimension_numbers<[1], [0], [0], [1], [0, 0, 1, 1], [], []>} : vector<8x32xbf16>, vector<32x64xbf16>, vector<8x64xf32> -> vector<8x64xf32>
    %c0_66 = arith.constant 0 : index
    %c0_67 = arith.constant 0 : index
    %c0_68 = arith.constant 0 : index
    %159 = vector.load %arg15[%c0_66, %c0_67, %c0_68] : memref<1x1x64xf32, #tpu.memory_space<vmem>>, vector<1x1x64xf32>
    %160 = vector.shape_cast %159 : vector<1x1x64xf32> to vector<1x64xf32>
    %161 = vector.broadcast %160 : vector<1x64xf32> to vector<8x64xf32>
    %162 = arith.addf %158, %161 : vector<8x64xf32>
    %163 = vector.extract_strided_slice %162 {offsets = [0, 0], sizes = [8, 32], strides = [1, 1]} : vector<8x64xf32> to vector<8x32xf32>
    %164 = vector.extract_strided_slice %162 {offsets = [0, 32], sizes = [8, 32], strides = [1, 1]} : vector<8x64xf32> to vector<8x32xf32>
    %165 = vector.extract_strided_slice %154 {offsets = [0, 0], sizes = [4, 8], strides = [1, 1]} : vector<4x32xf32> to vector<4x8xf32>
    %166 = arith.truncf %165 : vector<4x8xf32> to vector<4x8xbf16>
    %167 = vector.extract_strided_slice %163 {offsets = [0, 0], sizes = [8, 8], strides = [1, 1]} : vector<8x32xf32> to vector<8x8xf32>
    %168 = arith.truncf %167 : vector<8x8xf32> to vector<8x8xbf16>
    %169 = vector.extract_strided_slice %164 {offsets = [0, 0], sizes = [8, 8], strides = [1, 1]} : vector<8x32xf32> to vector<8x8xf32>
    %170 = arith.truncf %169 : vector<8x8xf32> to vector<8x8xbf16>
    %cst_69 = arith.constant dense<0.000000e+00> : vector<4x8xf32>
    %171 = tpu.matmul %166, %168, %cst_69 {dimension_numbers = #tpu.dot_dimension_numbers<[1], [1], [0], [0], [0, 0, 1, 0], [], []>} : vector<4x8xbf16>, vector<8x8xbf16>, vector<4x8xf32> -> vector<4x8xf32>
    %cst_70 = arith.constant 0.353553385 : f32
    %172 = vector.broadcast %cst_70 : f32 to vector<4x8xf32>
    %173 = arith.mulf %171, %172 : vector<4x8xf32>
    %174 = arith.addf %173, %11 : vector<4x8xf32>
    %cst_71 = arith.constant dense<0xFF800000> : vector<4xf32>
    %175 = vector.multi_reduction <maximumf>, %174, %cst_71 [1] : vector<4x8xf32> to vector<4xf32>
    %176 = vector.shape_cast %175 : vector<4xf32> to vector<4x1xf32>
    %177 = vector.broadcast %176 : vector<4x1xf32> to vector<4x8xf32>
    %178 = arith.subf %174, %177 : vector<4x8xf32>
    %179 = math.exp %178 : vector<4x8xf32>
    %cst_72 = arith.constant dense<0.000000e+00> : vector<4xf32>
    %180 = vector.multi_reduction <add>, %179, %cst_72 [1] : vector<4x8xf32> to vector<4xf32>
    %181 = vector.shape_cast %180 : vector<4xf32> to vector<4x1xf32>
    %182 = tpu.reciprocal %181 {approx = true} : vector<4x1xf32> -> vector<4x1xf32>
    %183 = vector.broadcast %182 : vector<4x1xf32> to vector<4x8xf32>
    %184 = arith.mulf %179, %183 : vector<4x8xf32>
    %185 = arith.truncf %184 : vector<4x8xf32> to vector<4x8xbf16>
    %cst_73 = arith.constant dense<0.000000e+00> : vector<4x8xf32>
    %186 = tpu.matmul %185, %170, %cst_73 {dimension_numbers = #tpu.dot_dimension_numbers<[1], [0], [0], [1], [0, 0, 1, 1], [], []>} : vector<4x8xbf16>, vector<8x8xbf16>, vector<4x8xf32> -> vector<4x8xf32>
    %187 = vector.extract_strided_slice %154 {offsets = [0, 8], sizes = [4, 8], strides = [1, 1]} : vector<4x32xf32> to vector<4x8xf32>
    %188 = arith.truncf %187 : vector<4x8xf32> to vector<4x8xbf16>
    %189 = vector.extract_strided_slice %163 {offsets = [0, 8], sizes = [8, 8], strides = [1, 1]} : vector<8x32xf32> to vector<8x8xf32>
    %190 = arith.truncf %189 : vector<8x8xf32> to vector<8x8xbf16>
    %191 = vector.extract_strided_slice %164 {offsets = [0, 8], sizes = [8, 8], strides = [1, 1]} : vector<8x32xf32> to vector<8x8xf32>
    %192 = arith.truncf %191 : vector<8x8xf32> to vector<8x8xbf16>
    %cst_74 = arith.constant dense<0.000000e+00> : vector<4x8xf32>
    %193 = tpu.matmul %188, %190, %cst_74 {dimension_numbers = #tpu.dot_dimension_numbers<[1], [1], [0], [0], [0, 0, 1, 0], [], []>} : vector<4x8xbf16>, vector<8x8xbf16>, vector<4x8xf32> -> vector<4x8xf32>
    %cst_75 = arith.constant 0.353553385 : f32
    %194 = vector.broadcast %cst_75 : f32 to vector<4x8xf32>
    %195 = arith.mulf %193, %194 : vector<4x8xf32>
    %196 = arith.addf %195, %11 : vector<4x8xf32>
    %cst_76 = arith.constant dense<0xFF800000> : vector<4xf32>
    %197 = vector.multi_reduction <maximumf>, %196, %cst_76 [1] : vector<4x8xf32> to vector<4xf32>
    %198 = vector.shape_cast %197 : vector<4xf32> to vector<4x1xf32>
    %199 = vector.broadcast %198 : vector<4x1xf32> to vector<4x8xf32>
    %200 = arith.subf %196, %199 : vector<4x8xf32>
    %201 = math.exp %200 : vector<4x8xf32>
    %cst_77 = arith.constant dense<0.000000e+00> : vector<4xf32>
    %202 = vector.multi_reduction <add>, %201, %cst_77 [1] : vector<4x8xf32> to vector<4xf32>
    %203 = vector.shape_cast %202 : vector<4xf32> to vector<4x1xf32>
    %204 = tpu.reciprocal %203 {approx = true} : vector<4x1xf32> -> vector<4x1xf32>
    %205 = vector.broadcast %204 : vector<4x1xf32> to vector<4x8xf32>
    %206 = arith.mulf %201, %205 : vector<4x8xf32>
    %207 = arith.truncf %206 : vector<4x8xf32> to vector<4x8xbf16>
    %cst_78 = arith.constant dense<0.000000e+00> : vector<4x8xf32>
    %208 = tpu.matmul %207, %192, %cst_78 {dimension_numbers = #tpu.dot_dimension_numbers<[1], [0], [0], [1], [0, 0, 1, 1], [], []>} : vector<4x8xbf16>, vector<8x8xbf16>, vector<4x8xf32> -> vector<4x8xf32>
    %209 = vector.extract_strided_slice %154 {offsets = [0, 16], sizes = [4, 8], strides = [1, 1]} : vector<4x32xf32> to vector<4x8xf32>
    %210 = arith.truncf %209 : vector<4x8xf32> to vector<4x8xbf16>
    %211 = vector.extract_strided_slice %163 {offsets = [0, 16], sizes = [8, 8], strides = [1, 1]} : vector<8x32xf32> to vector<8x8xf32>
    %212 = arith.truncf %211 : vector<8x8xf32> to vector<8x8xbf16>
    %213 = vector.extract_strided_slice %164 {offsets = [0, 16], sizes = [8, 8], strides = [1, 1]} : vector<8x32xf32> to vector<8x8xf32>
    %214 = arith.truncf %213 : vector<8x8xf32> to vector<8x8xbf16>
    %cst_79 = arith.constant dense<0.000000e+00> : vector<4x8xf32>
    %215 = tpu.matmul %210, %212, %cst_79 {dimension_numbers = #tpu.dot_dimension_numbers<[1], [1], [0], [0], [0, 0, 1, 0], [], []>} : vector<4x8xbf16>, vector<8x8xbf16>, vector<4x8xf32> -> vector<4x8xf32>
    %cst_80 = arith.constant 0.353553385 : f32
    %216 = vector.broadcast %cst_80 : f32 to vector<4x8xf32>
    %217 = arith.mulf %215, %216 : vector<4x8xf32>
    %218 = arith.addf %217, %11 : vector<4x8xf32>
    %cst_81 = arith.constant dense<0xFF800000> : vector<4xf32>
    %219 = vector.multi_reduction <maximumf>, %218, %cst_81 [1] : vector<4x8xf32> to vector<4xf32>
    %220 = vector.shape_cast %219 : vector<4xf32> to vector<4x1xf32>
    %221 = vector.broadcast %220 : vector<4x1xf32> to vector<4x8xf32>
    %222 = arith.subf %218, %221 : vector<4x8xf32>
    %223 = math.exp %222 : vector<4x8xf32>
    %cst_82 = arith.constant dense<0.000000e+00> : vector<4xf32>
    %224 = vector.multi_reduction <add>, %223, %cst_82 [1] : vector<4x8xf32> to vector<4xf32>
    %225 = vector.shape_cast %224 : vector<4xf32> to vector<4x1xf32>
    %226 = tpu.reciprocal %225 {approx = true} : vector<4x1xf32> -> vector<4x1xf32>
    %227 = vector.broadcast %226 : vector<4x1xf32> to vector<4x8xf32>
    %228 = arith.mulf %223, %227 : vector<4x8xf32>
    %229 = arith.truncf %228 : vector<4x8xf32> to vector<4x8xbf16>
    %cst_83 = arith.constant dense<0.000000e+00> : vector<4x8xf32>
    %230 = tpu.matmul %229, %214, %cst_83 {dimension_numbers = #tpu.dot_dimension_numbers<[1], [0], [0], [1], [0, 0, 1, 1], [], []>} : vector<4x8xbf16>, vector<8x8xbf16>, vector<4x8xf32> -> vector<4x8xf32>
    %231 = vector.extract_strided_slice %154 {offsets = [0, 24], sizes = [4, 8], strides = [1, 1]} : vector<4x32xf32> to vector<4x8xf32>
    %232 = arith.truncf %231 : vector<4x8xf32> to vector<4x8xbf16>
    %233 = vector.extract_strided_slice %163 {offsets = [0, 24], sizes = [8, 8], strides = [1, 1]} : vector<8x32xf32> to vector<8x8xf32>
    %234 = arith.truncf %233 : vector<8x8xf32> to vector<8x8xbf16>
    %235 = vector.extract_strided_slice %164 {offsets = [0, 24], sizes = [8, 8], strides = [1, 1]} : vector<8x32xf32> to vector<8x8xf32>
    %236 = arith.truncf %235 : vector<8x8xf32> to vector<8x8xbf16>
    %cst_84 = arith.constant dense<0.000000e+00> : vector<4x8xf32>
    %237 = tpu.matmul %232, %234, %cst_84 {dimension_numbers = #tpu.dot_dimension_numbers<[1], [1], [0], [0], [0, 0, 1, 0], [], []>} : vector<4x8xbf16>, vector<8x8xbf16>, vector<4x8xf32> -> vector<4x8xf32>
    %cst_85 = arith.constant 0.353553385 : f32
    %238 = vector.broadcast %cst_85 : f32 to vector<4x8xf32>
    %239 = arith.mulf %237, %238 : vector<4x8xf32>
    %240 = arith.addf %239, %11 : vector<4x8xf32>
    %cst_86 = arith.constant dense<0xFF800000> : vector<4xf32>
    %241 = vector.multi_reduction <maximumf>, %240, %cst_86 [1] : vector<4x8xf32> to vector<4xf32>
    %242 = vector.shape_cast %241 : vector<4xf32> to vector<4x1xf32>
    %243 = vector.broadcast %242 : vector<4x1xf32> to vector<4x8xf32>
    %244 = arith.subf %240, %243 : vector<4x8xf32>
    %245 = math.exp %244 : vector<4x8xf32>
    %cst_87 = arith.constant dense<0.000000e+00> : vector<4xf32>
    %246 = vector.multi_reduction <add>, %245, %cst_87 [1] : vector<4x8xf32> to vector<4xf32>
    %247 = vector.shape_cast %246 : vector<4xf32> to vector<4x1xf32>
    %248 = tpu.reciprocal %247 {approx = true} : vector<4x1xf32> -> vector<4x1xf32>
    %249 = vector.broadcast %248 : vector<4x1xf32> to vector<4x8xf32>
    %250 = arith.mulf %245, %249 : vector<4x8xf32>
    %251 = arith.truncf %250 : vector<4x8xf32> to vector<4x8xbf16>
    %cst_88 = arith.constant dense<0.000000e+00> : vector<4x8xf32>
    %252 = tpu.matmul %251, %236, %cst_88 {dimension_numbers = #tpu.dot_dimension_numbers<[1], [0], [0], [1], [0, 0, 1, 1], [], []>} : vector<4x8xbf16>, vector<8x8xbf16>, vector<4x8xf32> -> vector<4x8xf32>
    %253 = tpu.concatenate %186, %208, %230, %252 in 1 : vector<4x8xf32>, vector<4x8xf32>, vector<4x8xf32>, vector<4x8xf32> -> vector<4x32xf32>
    %254 = arith.truncf %253 : vector<4x32xf32> to vector<4x32xbf16>
    %c0_89 = arith.constant 0 : index
    %c0_90 = arith.constant 0 : index
    %c0_91 = arith.constant 0 : index
    %255 = vector.load %arg16[%c0_89, %c0_90, %c0_91] : memref<1x32x32xbf16, #tpu.memory_space<vmem>>, vector<1x32x32xbf16>
    %256 = vector.shape_cast %255 : vector<1x32x32xbf16> to vector<32x32xbf16>
    %cst_92 = arith.constant dense<0.000000e+00> : vector<4x32xf32>
    %257 = tpu.matmul %254, %256, %cst_92 {dimension_numbers = #tpu.dot_dimension_numbers<[1], [0], [0], [1], [0, 0, 1, 1], [], []>} : vector<4x32xbf16>, vector<32x32xbf16>, vector<4x32xf32> -> vector<4x32xf32>
    %c0_93 = arith.constant 0 : index
    %c0_94 = arith.constant 0 : index
    %c0_95 = arith.constant 0 : index
    %258 = vector.load %arg17[%c0_93, %c0_94, %c0_95] : memref<1x1x32xf32, #tpu.memory_space<vmem>>, vector<1x1x32xf32>
    %259 = vector.shape_cast %258 : vector<1x1x32xf32> to vector<1x32xf32>
    %260 = vector.broadcast %259 : vector<1x32xf32> to vector<4x32xf32>
    %261 = arith.addf %257, %260 : vector<4x32xf32>
    %262 = arith.addf %146, %261 : vector<4x32xf32>
    %cst_96 = arith.constant dense<0.000000e+00> : vector<4xf32>
    %263 = vector.multi_reduction <add>, %262, %cst_96 [1] : vector<4x32xf32> to vector<4xf32>
    %264 = vector.shape_cast %263 : vector<4xf32> to vector<4x1xf32>
    %cst_97 = arith.constant 3.200000e+01 : f32
    %265 = vector.broadcast %cst_97 : f32 to vector<4x1xf32>
    %266 = arith.divf %264, %265 : vector<4x1xf32>
    %267 = vector.broadcast %266 : vector<4x1xf32> to vector<4x32xf32>
    %268 = arith.subf %262, %267 : vector<4x32xf32>
    %269 = arith.mulf %268, %268 : vector<4x32xf32>
    %cst_98 = arith.constant dense<0.000000e+00> : vector<4xf32>
    %270 = vector.multi_reduction <add>, %269, %cst_98 [1] : vector<4x32xf32> to vector<4xf32>
    %271 = vector.shape_cast %270 : vector<4xf32> to vector<4x1xf32>
    %cst_99 = arith.constant 3.200000e+01 : f32
    %272 = vector.broadcast %cst_99 : f32 to vector<4x1xf32>
    %273 = arith.divf %271, %272 : vector<4x1xf32>
    %274 = vector.broadcast %266 : vector<4x1xf32> to vector<4x32xf32>
    %275 = arith.subf %262, %274 : vector<4x32xf32>
    %cst_100 = arith.constant 9.99999974E-6 : f32
    %276 = vector.broadcast %cst_100 : f32 to vector<4x1xf32>
    %277 = arith.addf %273, %276 : vector<4x1xf32>
    %278 = math.rsqrt %277 : vector<4x1xf32>
    %279 = vector.broadcast %278 : vector<4x1xf32> to vector<4x32xf32>
    %280 = arith.mulf %275, %279 : vector<4x32xf32>
    %c0_101 = arith.constant 0 : index
    %c0_102 = arith.constant 0 : index
    %c0_103 = arith.constant 0 : index
    %281 = vector.load %arg18[%c0_101, %c0_102, %c0_103] : memref<1x1x32xf32, #tpu.memory_space<vmem>>, vector<1x1x32xf32>
    %282 = vector.shape_cast %281 : vector<1x1x32xf32> to vector<1x32xf32>
    %283 = vector.broadcast %282 : vector<1x32xf32> to vector<4x32xf32>
    %284 = arith.mulf %280, %283 : vector<4x32xf32>
    %c0_104 = arith.constant 0 : index
    %c0_105 = arith.constant 0 : index
    %c0_106 = arith.constant 0 : index
    %285 = vector.load %arg19[%c0_104, %c0_105, %c0_106] : memref<1x1x32xf32, #tpu.memory_space<vmem>>, vector<1x1x32xf32>
    %286 = vector.shape_cast %285 : vector<1x1x32xf32> to vector<1x32xf32>
    %287 = vector.broadcast %286 : vector<1x32xf32> to vector<4x32xf32>
    %288 = arith.addf %284, %287 : vector<4x32xf32>
    %289 = arith.truncf %288 : vector<4x32xf32> to vector<4x32xbf16>
    %c0_107 = arith.constant 0 : index
    %c0_108 = arith.constant 0 : index
    %c0_109 = arith.constant 0 : index
    %290 = vector.load %arg20[%c0_107, %c0_108, %c0_109] : memref<1x32x64xbf16, #tpu.memory_space<vmem>>, vector<1x32x64xbf16>
    %291 = vector.shape_cast %290 : vector<1x32x64xbf16> to vector<32x64xbf16>
    %cst_110 = arith.constant dense<0.000000e+00> : vector<4x64xf32>
    %292 = tpu.matmul %289, %291, %cst_110 {dimension_numbers = #tpu.dot_dimension_numbers<[1], [0], [0], [1], [0, 0, 1, 1], [], []>} : vector<4x32xbf16>, vector<32x64xbf16>, vector<4x64xf32> -> vector<4x64xf32>
    %c0_111 = arith.constant 0 : index
    %c0_112 = arith.constant 0 : index
    %c0_113 = arith.constant 0 : index
    %293 = vector.load %arg21[%c0_111, %c0_112, %c0_113] : memref<1x1x64xf32, #tpu.memory_space<vmem>>, vector<1x1x64xf32>
    %294 = vector.shape_cast %293 : vector<1x1x64xf32> to vector<1x64xf32>
    %295 = vector.broadcast %294 : vector<1x64xf32> to vector<4x64xf32>
    %296 = arith.addf %292, %295 : vector<4x64xf32>
    %cst_114 = arith.constant 0.000000e+00 : f32
    %297 = vector.broadcast %cst_114 : f32 to vector<4x64xf32>
    %298 = arith.maximumf %296, %297 : vector<4x64xf32>
    %299 = arith.truncf %298 : vector<4x64xf32> to vector<4x64xbf16>
    %c0_115 = arith.constant 0 : index
    %c0_116 = arith.constant 0 : index
    %c0_117 = arith.constant 0 : index
    %300 = vector.load %arg22[%c0_115, %c0_116, %c0_117] : memref<1x64x32xbf16, #tpu.memory_space<vmem>>, vector<1x64x32xbf16>
    %301 = vector.shape_cast %300 : vector<1x64x32xbf16> to vector<64x32xbf16>
    %cst_118 = arith.constant dense<0.000000e+00> : vector<4x32xf32>
    %302 = tpu.matmul %299, %301, %cst_118 {dimension_numbers = #tpu.dot_dimension_numbers<[1], [0], [0], [1], [0, 0, 1, 1], [], []>} : vector<4x64xbf16>, vector<64x32xbf16>, vector<4x32xf32> -> vector<4x32xf32>
    %c0_119 = arith.constant 0 : index
    %c0_120 = arith.constant 0 : index
    %c0_121 = arith.constant 0 : index
    %303 = vector.load %arg23[%c0_119, %c0_120, %c0_121] : memref<1x1x32xf32, #tpu.memory_space<vmem>>, vector<1x1x32xf32>
    %304 = vector.shape_cast %303 : vector<1x1x32xf32> to vector<1x32xf32>
    %305 = vector.broadcast %304 : vector<1x32xf32> to vector<4x32xf32>
    %306 = arith.addf %302, %305 : vector<4x32xf32>
    %307 = arith.addf %288, %306 : vector<4x32xf32>
    %cst_122 = arith.constant dense<0.000000e+00> : vector<4xf32>
    %308 = vector.multi_reduction <add>, %307, %cst_122 [1] : vector<4x32xf32> to vector<4xf32>
    %309 = vector.shape_cast %308 : vector<4xf32> to vector<4x1xf32>
    %cst_123 = arith.constant 3.200000e+01 : f32
    %310 = vector.broadcast %cst_123 : f32 to vector<4x1xf32>
    %311 = arith.divf %309, %310 : vector<4x1xf32>
    %312 = vector.broadcast %311 : vector<4x1xf32> to vector<4x32xf32>
    %313 = arith.subf %307, %312 : vector<4x32xf32>
    %314 = arith.mulf %313, %313 : vector<4x32xf32>
    %cst_124 = arith.constant dense<0.000000e+00> : vector<4xf32>
    %315 = vector.multi_reduction <add>, %314, %cst_124 [1] : vector<4x32xf32> to vector<4xf32>
    %316 = vector.shape_cast %315 : vector<4xf32> to vector<4x1xf32>
    %cst_125 = arith.constant 3.200000e+01 : f32
    %317 = vector.broadcast %cst_125 : f32 to vector<4x1xf32>
    %318 = arith.divf %316, %317 : vector<4x1xf32>
    %319 = vector.broadcast %311 : vector<4x1xf32> to vector<4x32xf32>
    %320 = arith.subf %307, %319 : vector<4x32xf32>
    %cst_126 = arith.constant 9.99999974E-6 : f32
    %321 = vector.broadcast %cst_126 : f32 to vector<4x1xf32>
    %322 = arith.addf %318, %321 : vector<4x1xf32>
    %323 = math.rsqrt %322 : vector<4x1xf32>
    %324 = vector.broadcast %323 : vector<4x1xf32> to vector<4x32xf32>
    %325 = arith.mulf %320, %324 : vector<4x32xf32>
    %c0_127 = arith.constant 0 : index
    %c0_128 = arith.constant 0 : index
    %c0_129 = arith.constant 0 : index
    %326 = vector.load %arg24[%c0_127, %c0_128, %c0_129] : memref<1x1x32xf32, #tpu.memory_space<vmem>>, vector<1x1x32xf32>
    %327 = vector.shape_cast %326 : vector<1x1x32xf32> to vector<1x32xf32>
    %328 = vector.broadcast %327 : vector<1x32xf32> to vector<4x32xf32>
    %329 = arith.mulf %325, %328 : vector<4x32xf32>
    %c0_130 = arith.constant 0 : index
    %c0_131 = arith.constant 0 : index
    %c0_132 = arith.constant 0 : index
    %330 = vector.load %arg25[%c0_130, %c0_131, %c0_132] : memref<1x1x32xf32, #tpu.memory_space<vmem>>, vector<1x1x32xf32>
    %331 = vector.shape_cast %330 : vector<1x1x32xf32> to vector<1x32xf32>
    %332 = vector.broadcast %331 : vector<1x32xf32> to vector<4x32xf32>
    %333 = arith.addf %329, %332 : vector<4x32xf32>
    %c0_133 = arith.constant 0 : index
    %c0_134 = arith.constant 0 : index
    %334 = vector.load %arg30[%c0_133, %c0_134] : memref<4x32xf32, #tpu.memory_space<vmem>>, vector<4x32xf32>
    tpu.vector_store %arg30[%c0_133, %c0_134], %333 {strides = array<i32>} : memref<4x32xf32, #tpu.memory_space<vmem>>, vector<4x32xf32>,
    %c1_i32 = arith.constant 1 : i32
    %335 = arith.cmpi eq, %arg1, %c1_i32 : i32
    %336 = arith.extui %335 : i1 to i32
    %c0_i32_135 = arith.constant 0 : i32
    %337 = arith.cmpi ne, %336, %c0_i32_135 : i32
    scf.if %337 {
      %338 = arith.truncf %333 : vector<4x32xf32> to vector<4x32xbf16>
      %c0_136 = arith.constant 0 : index
      %c0_137 = arith.constant 0 : index
      %339 = vector.load %arg26[%c0_136, %c0_137] : memref<32x128xbf16, #tpu.memory_space<vmem>>, vector<32x128xbf16>
      %cst_138 = arith.constant dense<0.000000e+00> : vector<4x128xf32>
      %340 = tpu.matmul %338, %339, %cst_138 {dimension_numbers = #tpu.dot_dimension_numbers<[1], [0], [0], [1], [0, 0, 1, 1], [], []>} : vector<4x32xbf16>, vector<32x128xbf16>, vector<4x128xf32> -> vector<4x128xf32>
      %c0_139 = arith.constant 0 : index
      %c0_140 = arith.constant 0 : index
      %341 = vector.load %arg27[%c0_139, %c0_140] : memref<1x128xf32, #tpu.memory_space<vmem>>, vector<1x128xf32>
      %342 = vector.broadcast %341 : vector<1x128xf32> to vector<4x128xf32>
      %343 = arith.addf %340, %342 : vector<4x128xf32>
      %c0_141 = arith.constant 0 : index
      %c0_142 = arith.constant 0 : index
      %c0_143 = arith.constant 0 : index
      %344 = vector.load %arg28[%c0_141, %c0_142, %c0_143] : memref<1x4x128xf32, #tpu.memory_space<vmem>>, vector<1x4x128xf32>
      %345 = vector.shape_cast %344 : vector<1x4x128xf32> to vector<4x128xf32>
      %346 = vector.shape_cast %343 : vector<4x128xf32> to vector<1x4x128xf32>
      tpu.vector_store %arg28[%c0_141, %c0_142, %c0_143], %346 {strides = array<i32>} : memref<1x4x128xf32, #tpu.memory_space<vmem>>, vector<1x4x128xf32>,
      %c0_144 = arith.constant 0 : index
      %c0_145 = arith.constant 0 : index
      %c0_146 = arith.constant 0 : index
      %c0_147 = arith.constant 0 : index
      %347 = vector.load %arg29[%c0_144, %c0_145, %c0_146, %c0_147] : memref<1x4x4x8xf32, #tpu.memory_space<vmem>>, vector<1x1x4x8xf32>
      %348 = vector.shape_cast %347 : vector<1x1x4x8xf32> to vector<4x8xf32>
      %349 = vector.shape_cast %184 : vector<4x8xf32> to vector<1x1x4x8xf32>
      tpu.vector_store %arg29[%c0_144, %c0_145, %c0_146, %c0_147], %349 {strides = array<i32>} : memref<1x4x4x8xf32, #tpu.memory_space<vmem>>, vector<1x1x4x8xf32>,
      %c0_148 = arith.constant 0 : index
      %c1 = arith.constant 1 : index
      %c0_149 = arith.constant 0 : index
      %c0_150 = arith.constant 0 : index
      %350 = vector.load %arg29[%c0_148, %c1, %c0_149, %c0_150] : memref<1x4x4x8xf32, #tpu.memory_space<vmem>>, vector<1x1x4x8xf32>
      %351 = vector.shape_cast %350 : vector<1x1x4x8xf32> to vector<4x8xf32>
      %352 = vector.shape_cast %206 : vector<4x8xf32> to vector<1x1x4x8xf32>
      tpu.vector_store %arg29[%c0_148, %c1, %c0_149, %c0_150], %352 {strides = array<i32>} : memref<1x4x4x8xf32, #tpu.memory_space<vmem>>, vector<1x1x4x8xf32>,
      %c0_151 = arith.constant 0 : index
      %c2 = arith.constant 2 : index
      %c0_152 = arith.constant 0 : index
      %c0_153 = arith.constant 0 : index
      %353 = vector.load %arg29[%c0_151, %c2, %c0_152, %c0_153] : memref<1x4x4x8xf32, #tpu.memory_space<vmem>>, vector<1x1x4x8xf32>
      %354 = vector.shape_cast %353 : vector<1x1x4x8xf32> to vector<4x8xf32>
      %355 = vector.shape_cast %228 : vector<4x8xf32> to vector<1x1x4x8xf32>
      tpu.vector_store %arg29[%c0_151, %c2, %c0_152, %c0_153], %355 {strides = array<i32>} : memref<1x4x4x8xf32, #tpu.memory_space<vmem>>, vector<1x1x4x8xf32>,
      %c0_154 = arith.constant 0 : index
      %c3 = arith.constant 3 : index
      %c0_155 = arith.constant 0 : index
      %c0_156 = arith.constant 0 : index
      %356 = vector.load %arg29[%c0_154, %c3, %c0_155, %c0_156] : memref<1x4x4x8xf32, #tpu.memory_space<vmem>>, vector<1x1x4x8xf32>
      %357 = vector.shape_cast %356 : vector<1x1x4x8xf32> to vector<4x8xf32>
      %358 = vector.shape_cast %250 : vector<4x8xf32> to vector<1x1x4x8xf32>
      tpu.vector_store %arg29[%c0_154, %c3, %c0_155, %c0_156], %358 {strides = array<i32>} : memref<1x4x4x8xf32, #tpu.memory_space<vmem>>, vector<1x1x4x8xf32>,
    } else {
    }
    return
  }
  func.func @transform_0(%arg0: i32, %arg1: i32) -> (i32, i32, i32) {
    %c0_i32 = arith.constant 0 : i32
    %c0_i32_0 = arith.constant 0 : i32
    %c0_i32_1 = arith.constant 0 : i32
    return %arg0, %c0_i32, %c0_i32_0 : i32, i32, i32
  }
  func.func @transform_1(%arg0: i32, %arg1: i32) -> (i32, i32, i32) {
    %c0_i32 = arith.constant 0 : i32
    %c0_i32_0 = arith.constant 0 : i32
    %c0_i32_1 = arith.constant 0 : i32
    return %arg0, %c0_i32, %c0_i32_0 : i32, i32, i32
  }
  func.func @transform_2(%arg0: i32, %arg1: i32) -> (i32, i32, i32) {
    %c0_i32 = arith.constant 0 : i32
    %c0_i32_0 = arith.constant 0 : i32
    %c0_i32_1 = arith.constant 0 : i32
    return %arg0, %c0_i32, %c0_i32_0 : i32, i32, i32
  }
  func.func @transform_3(%arg0: i32, %arg1: i32) -> (i32, i32, i32) {
    %c0_i32 = arith.constant 0 : i32
    %c0_i32_0 = arith.constant 0 : i32
    %c0_i32_1 = arith.constant 0 : i32
    return %arg0, %c0_i32, %c0_i32_0 : i32, i32, i32
  }
  func.func @transform_4(%arg0: i32, %arg1: i32) -> (i32, i32, i32) {
    %c0_i32 = arith.constant 0 : i32
    %c0_i32_0 = arith.constant 0 : i32
    %c0_i32_1 = arith.constant 0 : i32
    return %arg1, %c0_i32, %c0_i32_0 : i32, i32, i32
  }
  func.func @transform_5(%arg0: i32, %arg1: i32) -> (i32, i32, i32) {
    %c0_i32 = arith.constant 0 : i32
    %c0_i32_0 = arith.constant 0 : i32
    %c0_i32_1 = arith.constant 0 : i32
    return %arg1, %c0_i32, %c0_i32_0 : i32, i32, i32
  }
  func.func @transform_6(%arg0: i32, %arg1: i32) -> (i32, i32, i32) {
    %c0_i32 = arith.constant 0 : i32
    %c0_i32_0 = arith.constant 0 : i32
    %c0_i32_1 = arith.constant 0 : i32
    return %arg1, %c0_i32, %c0_i32_0 : i32, i32, i32
  }
  func.func @transform_7(%arg0: i32, %arg1: i32) -> (i32, i32, i32) {
    %c0_i32 = arith.constant 0 : i32
    %c0_i32_0 = arith.constant 0 : i32
    %c0_i32_1 = arith.constant 0 : i32
    return %arg1, %c0_i32, %c0_i32_0 : i32, i32, i32
  }
  func.func @transform_8(%arg0: i32, %arg1: i32) -> (i32, i32, i32) {
    %c0_i32 = arith.constant 0 : i32
    %c0_i32_0 = arith.constant 0 : i32
    %c0_i32_1 = arith.constant 0 : i32
    return %arg1, %c0_i32, %c0_i32_0 : i32, i32, i32
  }
  func.func @transform_9(%arg0: i32, %arg1: i32) -> (i32, i32, i32) {
    %c0_i32 = arith.constant 0 : i32
    %c0_i32_0 = arith.constant 0 : i32
    %c0_i32_1 = arith.constant 0 : i32
    return %arg1, %c0_i32, %c0_i32_0 : i32, i32, i32
  }
  func.func @transform_10(%arg0: i32, %arg1: i32) -> (i32, i32, i32) {
    %c0_i32 = arith.constant 0 : i32
    %c0_i32_0 = arith.constant 0 : i32
    %c0_i32_1 = arith.constant 0 : i32
    return %arg1, %c0_i32, %c0_i32_0 : i32, i32, i32
  }
  func.func @transform_11(%arg0: i32, %arg1: i32) -> (i32, i32, i32) {
    %c0_i32 = arith.constant 0 : i32
    %c0_i32_0 = arith.constant 0 : i32
    %c0_i32_1 = arith.constant 0 : i32
    return %arg1, %c0_i32, %c0_i32_0 : i32, i32, i32
  }
  func.func @transform_12(%arg0: i32, %arg1: i32) -> (i32, i32, i32) {
    %c0_i32 = arith.constant 0 : i32
    %c0_i32_0 = arith.constant 0 : i32
    %c0_i32_1 = arith.constant 0 : i32
    return %arg1, %c0_i32, %c0_i32_0 : i32, i32, i32
  }
  func.func @transform_13(%arg0: i32, %arg1: i32) -> (i32, i32, i32) {
    %c0_i32 = arith.constant 0 : i32
    %c0_i32_0 = arith.constant 0 : i32
    %c0_i32_1 = arith.constant 0 : i32
    return %arg1, %c0_i32, %c0_i32_0 : i32, i32, i32
  }
  func.func @transform_14(%arg0: i32, %arg1: i32) -> (i32, i32, i32) {
    %c0_i32 = arith.constant 0 : i32
    %c0_i32_0 = arith.constant 0 : i32
    %c0_i32_1 = arith.constant 0 : i32
    return %arg1, %c0_i32, %c0_i32_0 : i32, i32, i32
  }
  func.func @transform_15(%arg0: i32, %arg1: i32) -> (i32, i32, i32) {
    %c0_i32 = arith.constant 0 : i32
    %c0_i32_0 = arith.constant 0 : i32
    %c0_i32_1 = arith.constant 0 : i32
    return %arg1, %c0_i32, %c0_i32_0 : i32, i32, i32
  }
  func.func @transform_16(%arg0: i32, %arg1: i32) -> (i32, i32, i32) {
    %c0_i32 = arith.constant 0 : i32
    %c0_i32_0 = arith.constant 0 : i32
    %c0_i32_1 = arith.constant 0 : i32
    return %arg1, %c0_i32, %c0_i32_0 : i32, i32, i32
  }
  func.func @transform_17(%arg0: i32, %arg1: i32) -> (i32, i32, i32) {
    %c0_i32 = arith.constant 0 : i32
    %c0_i32_0 = arith.constant 0 : i32
    %c0_i32_1 = arith.constant 0 : i32
    return %arg1, %c0_i32, %c0_i32_0 : i32, i32, i32
  }
  func.func @transform_18(%arg0: i32, %arg1: i32) -> (i32, i32, i32) {
    %c0_i32 = arith.constant 0 : i32
    %c0_i32_0 = arith.constant 0 : i32
    %c0_i32_1 = arith.constant 0 : i32
    return %arg1, %c0_i32, %c0_i32_0 : i32, i32, i32
  }
  func.func @transform_19(%arg0: i32, %arg1: i32) -> (i32, i32, i32) {
    %c0_i32 = arith.constant 0 : i32
    %c0_i32_0 = arith.constant 0 : i32
    %c0_i32_1 = arith.constant 0 : i32
    return %arg1, %c0_i32, %c0_i32_0 : i32, i32, i32
  }
  func.func @transform_20(%arg0: i32, %arg1: i32) -> (i32, i32, i32) {
    %c0_i32 = arith.constant 0 : i32
    %c0_i32_0 = arith.constant 0 : i32
    %c0_i32_1 = arith.constant 0 : i32
    return %arg1, %c0_i32, %c0_i32_0 : i32, i32, i32
  }
  func.func @transform_21(%arg0: i32, %arg1: i32) -> (i32, i32, i32) {
    %c0_i32 = arith.constant 0 : i32
    %c0_i32_0 = arith.constant 0 : i32
    %c0_i32_1 = arith.constant 0 : i32
    return %arg1, %c0_i32, %c0_i32_0 : i32, i32, i32
  }
  func.func @transform_22(%arg0: i32, %arg1: i32) -> (i32, i32, i32) {
    %c0_i32 = arith.constant 0 : i32
    %c0_i32_0 = arith.constant 0 : i32
    %c0_i32_1 = arith.constant 0 : i32
    return %arg1, %c0_i32, %c0_i32_0 : i32, i32, i32
  }
  func.func @transform_23(%arg0: i32, %arg1: i32) -> (i32, i32, i32) {
    %c0_i32 = arith.constant 0 : i32
    %c0_i32_0 = arith.constant 0 : i32
    %c0_i32_1 = arith.constant 0 : i32
    return %arg1, %c0_i32, %c0_i32_0 : i32, i32, i32
  }
  func.func @transform_24(%arg0: i32, %arg1: i32) -> (i32, i32) {
    %c0_i32 = arith.constant 0 : i32
    %c0_i32_0 = arith.constant 0 : i32
    %c0_i32_1 = arith.constant 0 : i32
    return %c0_i32, %c0_i32_0 : i32, i32
  }
  func.func @transform_25(%arg0: i32, %arg1: i32) -> (i32, i32) {
    %c0_i32 = arith.constant 0 : i32
    %c0_i32_0 = arith.constant 0 : i32
    %c0_i32_1 = arith.constant 0 : i32
    return %c0_i32, %c0_i32_0 : i32, i32
  }
  func.func @transform_26(%arg0: i32, %arg1: i32) -> (i32, i32, i32) {
    %c0_i32 = arith.constant 0 : i32
    %c0_i32_0 = arith.constant 0 : i32
    %c0_i32_1 = arith.constant 0 : i32
    return %arg0, %c0_i32, %c0_i32_0 : i32, i32, i32
  }
  func.func @transform_27(%arg0: i32, %arg1: i32) -> (i32, i32, i32, i32) {
    %c0_i32 = arith.constant 0 : i32
    %c0_i32_0 = arith.constant 0 : i32
    %c0_i32_1 = arith.constant 0 : i32
    %c0_i32_2 = arith.constant 0 : i32
    return %arg0, %c0_i32, %c0_i32_0, %c0_i32_1 : i32, i32, i32, i32
  }
}

</mosaic_0001>

<bundles_post_ra>
// kernel: decoder_forward.1
= control target key start
LH: loop header
LB: loop body
LE: loop exit
PB: predicated region body
PF: predicated region fallthrough
CT: control target
= control target key end

     0   :  { %s4493_s0 = inlined_call_operand.vmem [shape: f32[2,4,32], index: 0, kind: input, shape index: {}]   ;;  %s4494_s1 = inlined_call_operand.vmem [shape: f32[2,8,32], index: 1, kind: input, shape index: {}]   ;;  %s4495_s2 = inlined_call_operand.vmem [shape: bf16[2,4,4], index: 2, kind: input, shape index: {}]   ;;  %s4496_s3 = inlined_call_operand.vmem [shape: bf16[2,4,8], index: 3, kind: input, shape index: {}]   ;;  %s4497_s4 = inlined_call_operand.vmem [shape: bf16[2,32,96], index: 4, kind: input, shape index: {}]   ;;  %s4498_s5 = inlined_call_operand.vmem [shape: f32[2,1,96], index: 5, kind: input, shape index: {}]   ;;  %s4499_s6 = inlined_call_operand.vmem [shape: bf16[2,32,32], index: 6, kind: input, shape index: {}]   ;;  %s4500_s7 = inlined_call_operand.vmem [shape: f32[2,1,32], index: 7, kind: input, shape index: {}]   ;;  %s4501_s8 = inlined_call_operand.vmem [shape: f32[2,1,32], index: 8, kind: input, shape index: {}]   ;;  %s4502_s9 = inlined_call_operand.vmem [shape: f32[2,1,32], index: 9, kind: input, shape index: {}]   ;;  %s4503_s10 = inlined_call_operand.vmem [shape: bf16[2,32,32], index: 10, kind: input, shape index: {}]   ;;  %s4504_s11 = inlined_call_operand.vmem [shape: f32[2,1,32], index: 11, kind: input, shape index: {}]   ;;  %s4505_s12 = inlined_call_operand.vmem [shape: bf16[2,32,64], index: 12, kind: input, shape index: {}]   ;;  %s4506_s13 = inlined_call_operand.vmem [shape: f32[2,1,64], index: 13, kind: input, shape index: {}]   ;;  %s4507_s14 = inlined_call_operand.vmem [shape: bf16[2,32,32], index: 14, kind: input, shape index: {}]   ;;  %s4508_s15 = inlined_call_operand.vmem [shape: f32[2,1,32], index: 15, kind: input, shape index: {}]   ;;  %s4509_s16 = inlined_call_operand.vmem [shape: f32[2,1,32], index: 16, kind: input, shape index: {}]   ;;  %s4510_s17 = inlined_call_operand.vmem [shape: f32[2,1,32], index: 17, kind: input, shape index: {}]   ;;  %s4511_s18 = inlined_call_operand.vmem [shape: bf16[2,32,64], index: 18, kind: input, shape index: {}]   ;;  %s4512_s19 = inlined_call_operand.vmem [shape: f32[2,1,64], index: 19, kind: input, shape index: {}]   ;;  %s4513_s20 = inlined_call_operand.vmem [shape: bf16[2,64,32], index: 20, kind: input, shape index: {}]   ;;  %s4514_s21 = inlined_call_operand.vmem [shape: f32[2,1,32], index: 21, kind: input, shape index: {}]   ;;  %s4515_s22 = inlined_call_operand.vmem [shape: f32[2,1,32], index: 22, kind: input, shape index: {}]   ;;  %s4516_s23 = inlined_call_operand.vmem [shape: f32[2,1,32], index: 23, kind: input, shape index: {}]   ;;  %s4517_s24 = inlined_call_operand.vmem [shape: bf16[32,128], index: 24, kind: input, shape index: {}]   ;;  %s4518_s25 = inlined_call_operand.vmem [shape: f32[1,128], index: 25, kind: input, shape index: {}]   ;;  %s4519_s26 = inlined_call_operand.vmem [shape: f32[2,4,128], index: 26, kind: output, shape index: {0}]   ;;  %s4520_s27 = inlined_call_operand.hbm [shape: f32[2,4,4,8], index: 27, kind: output, shape index: {1}]  }
   0x1   :  { %4540 = sst [smem:[#allocation25_spill]] %s4493_s0 }
   0x2   :  { %4541 = sst [smem:[#allocation26_spill]] %s4494_s1 }
   0x3   :  { %4542 = sst [smem:[#allocation27_spill]] %s4495_s2 }
   0x4   :  { %4543 = sst [smem:[#allocation28_spill]] %s4496_s3 }
   0x5   :  { %4544 = sst [smem:[#allocation29_spill]] %s4497_s4 }
   0x6   :  { %4545 = sst [smem:[#allocation30_spill]] %s4498_s5 }
   0x7   :  { %4546 = sst [smem:[#allocation31_spill]] %s4499_s6 }
   0x8   :  { %4547 = sst [smem:[#allocation32_spill]] %s4500_s7 }
   0x9   :  { %4548 = sst [smem:[#allocation33_spill]] %s4501_s8 }
   0xa   :  { %4549 = sst [smem:[#allocation34_spill]] %s4502_s9 }
   0xb   :  { %4550 = sst [smem:[#allocation35_spill]] %s4503_s10 }
   0xc   :  { %4551 = sst [smem:[#allocation36_spill]] %s4504_s11 }
   0xd   :  { %4552 = sst [smem:[#allocation37_spill]] %s4505_s12 }
   0xe   :  { %4553 = sst [smem:[#allocation38_spill]] %s4507_s14 }
   0xf   :  { %4554 = sst [smem:[#allocation39_spill]] %s4509_s16 }
  0x10   :  { %4555 = sst [smem:[#allocation40_spill]] %s4510_s17 }
  0x11   :  { %4556 = sst [smem:[#allocation41_spill]] %s4511_s18 }
  0x12   :  { %4557 = sst [smem:[#allocation42_spill]] %s4512_s19 }
  0x13   :  { %4558 = sst [smem:[#allocation43_spill]] %s4513_s20 }
  0x14   :  { %4559 = sst [smem:[#allocation44_spill]] %s4515_s22 }
  0x15   :  { %4560 = sst [smem:[#allocation45_spill]] %s4516_s23 }
  0x16   :  { %4561 = sst [smem:[#allocation46_spill]] %s4517_s24 }
  0x17   :  { %4562 = sst [smem:[#allocation47_spill]] %s4518_s25 }
  0x18   :  { %4563 = sst [smem:[#allocation48_spill]] %s4519_s26 }
  0x19   :  { %4564 = sst [smem:[#allocation49_spill]] %s4520_s27 }
  0x1a   :  { %33 = vsyncpa [#allocation4], 0 }
  0x1b   :  { %35 = vsyncpa [#allocation4 + $0x1], 0  ;;  %s3894_s7 = smov 0   ;;  %s3896_s4 = smov 0  }
  0x1c   :  { %s3898_s8 = smov 0   ;;  %s3900_s30 = smov 0  }
  0x1d   :  { %s3902_s9 = smov 0   ;;  %s3904_s5 = smov 0  }
  0x1e   :  { %s3906_s28 = smov 0   ;;  %s3908_s0 = smov 0  }
  0x1f LB: > { %4565 = sst [smem:[#allocation6_spill]] %s3704_s7  ;;  %s3173_s10 = sadd.s32 4294967295, %s3732_s0   ;;  %s3732_s0 = sphi %s3908_s0, %s41_s0   ;;  %s3728_s28 = sphi %s3906_s28, %s4654_s28   ;;  %s3724_s5 = sphi %s3904_s5, %s4653_s5   ;;  %s3720_s9 = sphi %s3902_s9, %s4652_s9   ;;  %s3716_s30 = sphi %s3900_s30, %s4651_s30   ;;  %s3712_s8 = sphi %s3898_s8, %s4650_s8   ;;  %s3708_s4 = sphi %s3896_s4, %s4649_s4   ;;  %s3704_s7 = sphi %s3894_s7, %s4648_s7  }
  0x20   : > { %4566 = sst [smem:[#allocation7_spill]] %s3708_s4  ;;  %s3174_s29 = sadd.s32 4294967294, %s3732_s0  }
  0x21   : > { %4567 = sst [smem:[#allocation8_spill]] %s3712_s8  ;;  %s50_s1 = sadd.s32 1, %s3724_s5 }
  0x22   : > { %4568 = sst [smem:[#allocation9_spill]] %s3716_s30  ;;  %p51_p0 = scmp.ge.s32.totalorder %s50_s1, 2 }
  0x23   : > { %4569 = sst [smem:[#allocation10_spill]] %s3720_s9  ;;  %s53_s6 = sadd.s32 1, %s3728_s28 }
  0x24   : > { %4570 = sst [smem:[#allocation11_spill]] %s3724_s5  ;;  %p762_p1 = scmp.ne.s32.totalorder %s3712_s8, %s3708_s4 }
  0x25   : > { %4571 = sst [smem:[#allocation12_spill]] %s3728_s28  ;;  %p763_p2 = scmp.eq.s32.totalorder %s3173_s10, 3 }
  0x26   : > { %4572 = sst [smem:[#allocation13_spill]] %s3732_s0  ;;  %s4656_s1 = smov (%p51_p0, %s50_s1), 0 }
  0x27   : > { %4573 = sst [smem:[#allocation14_spill]] %s4656_s1  ;;  %s4658_s6 = smov (!%p51_p0, %s53_s6), %s3728_s28 }
  0x28   : > { %p3943_p3 = por %p763_p2, %p762_p1  ;;  %p768_p4 = scmp.ne.s32.totalorder %s3708_s4, %s3704_s7 }
  0x29   : > { %p55_p5 = scmp.ge.s32.totalorder %s4658_s6, 2  ;;  %p769_p6 = scmp.eq.s32.totalorder %s3174_s29, 3 }
  0x2a   : > { %s4574_s11 = scalar_select %p3943_p3, 1, 0 }
  0x2b   : > { %p3177_p7 = scmp.ge.s32.totalorder %s3732_s0, 1  ;;  %p955_p8 = scmp.lt.s32.totalorder %s3732_s0, 5 }
  0x2c   : > { %4575 = sst [smem:[#allocation15_spill]] %s4574_s11  ;;  %s4660_s6 = smov (%p55_p5, %s4658_s6), 0 }
  0x2d   : > { %4576 = sst [smem:[#allocation16_spill]] %s4660_s6  ;;  %p3953_p9 = por %p769_p6, %p768_p4 }
  0x2e   : > { %p956_p10 = pnand %p3177_p7, %p955_p8  ;;  %s749_s3 = ssub.s32 %s3728_s28, %s4660_s6 }
  0x2f   : > { %s4577_s2 = scalar_select %p3953_p9, 1, 0 }
  0x30   : > { %s752_s10 = sadd.s32 1, %s3712_s8  ;;  %p750_p11 = scmp.eq.s32.totalorder %s749_s3, 0 }
  0x31   : > { %4578 = sst [smem:[#allocation17_spill]] %s4577_s2  ;;  %959 = sbr.rel (%p956_p10) target bundleno = 4418 (0x1142), region = 124 }
  0x32   : > { %s3961_s1 = scalar_select %p750_p11, %s3712_s8, %s752_s10  }
  0x34   : > { %4579 = sst [smem:[#allocation18_spill]] %s3961_s1 }
  0x36   : > { %s4524_s29 = sand.u32 1, %s3708_s4   ;;  %p1116_p12 = scmp.lt.s32.totalorder %s3720_s9, 1 }
  0x37   : > { %s3967_s5 = sshll.u32 %s4524_s29, 4  ;;  %p1132_p13 = scmp.lt.s32.totalorder %s3716_s30, 1 }
  0x38   : > { %s3971_s2 = scalar_select %p1116_p12, %s3720_s9, 1 }
  0x39   : > { %s3974_s3 = scalar_select %p1132_p13, %s3716_s30, 1 }
  0x3a   : > { %s4537_s10 = sshll.u32 %s3971_s2, 2  ;;  %s3180_s6 = sshll.u32 %s3971_s2, 3 }
  0x3b   : > { %s4580_s1 = sld [smem:[#allocation25_spill]]  ;;  %s3181_s4 = sshll.u32 %s3971_s2, 1 }
  0x3c   : > { %s4582_s27 = sld [smem:[#allocation26_spill]]  ;;  %s3264_s9 = sshll.u32 %s3974_s3, 4 }
  0x3d   : > { %s4584_s30 = sld [smem:[#allocation27_spill]] }
  0x3e   : > { %s4586_s29 = sld [smem:[#allocation28_spill]] }
  0x3f   : > { %s4588_s7 = sld [smem:[#allocation29_spill]] }
  0x40   : > { %s4596_s24 = sld [smem:[#allocation35_spill]] }
  0x41   : > { %s3983_s8 = scalar_lea.vmem %s4580_s1, %s4537_s10  ;;  %s4598_s12 = sld [smem:[#allocation37_spill]] }
  0x42   : > { %4581 = sst [smem:[#allocation19_spill]] %s3983_s8  ;;  %s3988_s11 = scalar_lea.vmem %s4582_s27, %s3180_s6 }
  0x43   : > { %4583 = sst [smem:[#allocation20_spill]] %s3988_s11  ;;  %s3995_s26 = scalar_lea.vmem %s4584_s30, %s3181_s4 }
  0x44   : > { %4585 = sst [smem:[#allocation21_spill]] %s3995_s26  ;;  %s4000_s1 = scalar_lea.vmem %s4586_s29, %s3181_s4 }
  0x45   : > { %4587 = sst [smem:[#allocation22_spill]] %s4000_s1  ;;  %s4005_s27 = scalar_lea.vmem %s4588_s7, %s3264_s9 }
  0x46   : > { %4589 = sst [smem:[#allocation23_spill]] %s4005_s27  ;;  %s4031_s25 = scalar_lea.vmem %s4596_s24, %s3264_s9 }
  0x47   : > { %s4591_s30 = sld [smem:[#allocation31_spill]]  ;;  %s4040_s8 = scalar_lea.vmem %s4598_s12, %s3264_s9 }
  0x48   : > { %s4599_s14 = sld [smem:[#allocation38_spill]]  ;;  %s3270_s12 = sshll.u32 %s3974_s3, 5 }
  0x49   : > { %s4602_s18 = sld [smem:[#allocation41_spill]]  ;;  %s4607_s11 = sshll.u32 %s3971_s2, 2 }
  0x4a   : > { %s4604_s4 = sld [smem:[#allocation43_spill]]  ;;  %s4098_s6 = scalar_lea.vmem [#allocation3], %s3967_s5 }
  0x4b   : > { %s4605_s7 = sld [smem:[#allocation44_spill]] }
  0x4c   : > { %s4608_s19 = sld [smem:[#allocation48_spill]] }
  0x4d   : > { %s4014_s26 = scalar_lea.vmem %s4591_s30, %s3264_s9  ;;  %s4609_s24 = sld [smem:[#allocation9_spill]] }
  0x4e   : > { %4592 = sst [smem:[#allocation24_spill]] %s4014_s26  ;;  %s4049_s22 = scalar_lea.vmem %s4599_s14, %s3264_s9 }
  0x4f   : > { %s4066_s20 = scalar_lea.vmem %s4602_s18, %s3264_s9  ;;  %s1199_s26 = scalar_lea.vmem %s4514_s21, %s3974_s3 }
  0x50   : > { %s4080_s14 = scalar_lea.vmem %s4604_s4, %s3270_s12  ;;  %s4606_s18 = sld [smem:[#allocation45_spill]] }
  0x51   : > { %s1202_s29 = scalar_lea.vmem %s4605_s7, %s3974_s3 }
  0x52   : > { %s4095_s16 = scalar_lea.vmem %s4608_s19, %s4607_s11 }
  0x53   : > { %p3198_p0 = scmp.ne.s32.totalorder %s4609_s24, 0 }
  0x54   : > { %s4610_s12 = sld [smem:[#allocation19_spill]] (!%p3198_p0) }
  0x55   : > { %1214 = sbr.rel (%p3198_p0) target bundleno = 92 (0x5c), region = 128 }
  0x56   : > { %s1205_s17 = scalar_lea.vmem %s4606_s18, %s3974_s3 }
  0x5a   : > { %v1215_v0 = vld [vmem:[%s4610_s12] sm:$0xf]  ;;  %vm1216_vm0 = vcmask 257024  }
  0x5b   : > { %1217 = vst.msk [vmem:[#allocation2] sm:$0xf] %vm1216_vm0, %v1215_v0 }
  0x5c PF: > { %s4611_s7 = sld [smem:[#allocation23_spill]]  ;;  %v3734_v2 = vmov 0.0   ;;  %vm3735_vm1 = vmmov 0   ;;  %vm1248_vm2 = vcmask 261120   ;;  %s3736_s4 = smov 120   ;;  %vm1296_vm3 = vcmask 64512  }
  0x5d   : > { %3330 = vmatprep.subr.bf16.mxu1 %v3734_v2  ;;  %3344 = vmatprep.subr.bf16.mxu0 %v3734_v2  ;;  %s4612_s5 = sld [smem:[#allocation30_spill]]  ;;  %s3737_s27 = smov 96   ;;  %vm1345_vm4 = vcmask 27648   ;;  %vm1364_vm5 = vcmask 1041408   ;;  %vm1360_vm6 = vcmask 31744   ;;  %vm1757_vm7 = vcmask 130048  }
  0x5e   : > { %3334 = vmatprep.mubr.msk.bf16.mxu1 %vm3735_vm1, %v3734_v2  ;;  %3346 = vmatprep.mubr.msk.bf16.mxu0 %vm3735_vm1, %v3734_v2  ;;  %s3738_s30 = smov 80   ;;  %s3739_s23 = smov 88   ;;  %vm1759_vm8 = vcmask 195584   ;;  %vm1829_vm9 = vcmask 257024   ;;  %vm2044_vm10 = vcmask 60416   ;;  %vm2063_vm11 = vcmask 1043456  }
  0x5f   : > { %s3740_s28 = smov 72   ;;  %s3741_s1 = smov 112   ;;  %vm2664_vm12 = vcmask 523264  }
  0x60   : > { %s3742_s9 = smov 104   ;;  %s4614_s10 = sld [smem:[#allocation21_spill]] }
  0x61   : > { %s3743_s11 = smov 56   ;;  %s3744_s0 = smov 64  }
  0x62   : > { %v3584_v1 = vld [vmem:[%s4611_s7 + $0x8] sm:$0xff]   ;;  %v3585_v3 = vld [vmem:[%s4611_s7] sm:$0xff]   ;;  %s3745_s24 = smov 40   ;;  %s3746_s12 = smov 48  }
  0x63   : > { %3331 = vmatpush3.bf16.msra.mxu1 %v3584_v1  ;;  %v4108_v4 = vld [vmem:[#allocation2] sm:$0xf]  ;;  %s4613_s2 = scalar_lea.vmem %s4612_s5, %s3974_s3  ;;  %s4615_s7 = sld [smem:[#allocation24_spill]] }
  0x64   : > { %3332 = vmatprep.subr.bf16.mxu1 %v3734_v2  ;;  %v1224_v5 = vpack.c.bf16 %v4108_v4, %v4108_v4  ;;  %v3199_v6 = vld [vmem:[%s4613_s2] ss:$0 sm:$0xff]  ;;  %s3747_s18 = smov 8   ;;  %s3748_s19 = smov 16  }
  0x65   : > { %s3749_s5 = smov 24   ;;  %s4619_s2 = sld [smem:[#allocation33_spill]] }
  0x66   : > { %v1220_v24 = vld [vmem:[%s4614_s10] sm:$0x3] }
  0x67   : > { %3333 = vmatpush3.bf16.msra.mxu1 %v3585_v3  ;;  %v1221_v25 = vunpack.c.l.bf16 %v1220_v24 }
  0x68   : > { %3338 = vmatprep.subr.bf16.mxu1 %v3734_v2 }
  0x6a   : > { %3335 = vmatmul.mubr.msk.bf16.vlgmr.msra.gmra.mxu1 %vm1248_vm2, %v1224_v5 }
  0x6b   : > { %3340 = vmatprep.mubr.msk.bf16.mxu1 %vm3735_vm1, %v3734_v2  ;;  %s4620_s10 = scalar_lea.vmem %s4619_s2, %s3974_s3  ;;  %s4623_s2 = scalar_lea.vmem %s4506_s13, %s3974_s3 }
 0x12a   : > { %v1286_v7 = vpop.f32.mrf.mxu1 }
 0x12b   : > { %v1287_v8 = vadd.f32 %v3199_v6, %v1286_v7 }
 0x12c   : > { %v3336_v9 = vpop.f32.mrf.mxu1 }
 0x12d   : > { %v4124_v10 = vpack.c.bf16 %v1287_v8, %v1287_v8 }
 0x12e   : > { %v1289_v11 = vpop.f32.mrf.mxu1 }
 0x12f   : > { %1408 = vrot.lane.b32.xlu1 %v4124_v10, %s3736_s4  ;;  %1294 = vrot.lane.b32.xlu0 %v4124_v10, %s3737_s27 }
 0x130   : > { %v3337_v12 = vpop.f32.mrf.mxu1 }
 0x133   : > { %1522 = vrot.lane.b32.xlu1 %v4124_v10, %s3738_s30  ;;  %1410 = vrot.lane.b32.xlu0 %v4124_v10, %s3739_s23 }
 0x137   : > { %1634 = vrot.lane.b32.xlu1 %v4124_v10, %s3740_s28  ;;  %1520 = vrot.lane.b32.xlu0 %v4124_v10, %s3741_s1 }
 0x13b   : > { %1632 = vrot.lane.b32.xlu0 %v4124_v10, %s3742_s9 }
 0x1a1   : > { %v1295_v13 = vpop.permute.xlu0 %1294  ;;  %v1409_v16 = vpop.permute.xlu1 %1408 }
 0x1a2   : > { %v1301_v14 = vsel %vm1296_vm3, %v1295_v13, 0 }
 0x1a3   : > { %3339 = vmatpush3.bf16.xpose.msra.mxu1 %v1301_v14 }
 0x1a4   : > { %3350 = vmatprep.subr.bf16.mxu1 %v3734_v2 }
 0x1a5   : > { %v1411_v15 = vpop.permute.xlu0 %1410  ;;  %v1523_v18 = vpop.permute.xlu1 %1522 }
 0x1a6   : > { %v1416_v17 = vsel %vm1296_vm3, %v1411_v15, 0  ;;  %v1528_v19 = vsel %vm1296_vm3, %v1523_v18, 0 }
 0x1a9   : > { %v1635_v20 = vpop.permute.xlu1 %1634  ;;  %v1521_v21 = vpop.permute.xlu0 %1520 }
 0x1aa   : > { %3341 = vmatmul.mubr.msk.bf16.vlgmr.msra.gmra.mxu1 %vm1296_vm3, %v4124_v10  ;;  %v1640_v22 = vsel %vm1296_vm3, %v1635_v20, 0 }
 0x1ab   : > { %3351 = vmatpush3.bf16.xpose.msra.mxu1 %v1416_v17  ;;  %3352 = vmatprep.mubr.msk.bf16.mxu1 %vm3735_vm1, %v3734_v2 }
 0x1ac   : > { %3362 = vmatprep.subr.bf16.mxu1 %v3734_v2 }
 0x1ad   : > { %v1633_v23 = vpop.permute.xlu0 %1632 }
 0x1b2   : > { %3353 = vmatmul.mubr.msk.bf16.vlgmr.msra.gmra.mxu1 %vm1296_vm3, %v1409_v16 }
 0x1b3   : > { %3363 = vmatpush3.bf16.xpose.msra.mxu1 %v1528_v19  ;;  %3364 = vmatprep.mubr.msk.bf16.mxu1 %vm3735_vm1, %v3734_v2 }
 0x1b4   : > { %3374 = vmatprep.subr.bf16.mxu1 %v3734_v2 }
 0x1ba   : > { %3365 = vmatmul.mubr.msk.bf16.vlgmr.msra.gmra.mxu1 %vm1296_vm3, %v1521_v21 }
 0x1bb   : > { %3375 = vmatpush3.bf16.xpose.msra.mxu1 %v1640_v22  ;;  %3376 = vmatprep.mubr.msk.bf16.mxu1 %vm3735_vm1, %v3734_v2 }
 0x1bc   : > { %3386 = vmatprep.subr.bf16.mxu1 %v3734_v2 }
 0x1c2   : > { %3377 = vmatmul.mubr.msk.bf16.vlgmr.msra.gmra.mxu1 %vm1296_vm3, %v1633_v23 }
 0x1c3   : > { %3390 = vmatprep.mubr.msk.bf16.mxu1 %vm3735_vm1, %v3734_v2 }
 0x26a   : > { %v1337_v26 = vpop.f32.mrf.mxu1 }
 0x26b   : > { %v1343_v27 = vmul.f32 0.35355338, %v1337_v26 }
 0x26c   : > { %v3342_v28 = vpop.f32.mrf.mxu1 }
 0x26d   : > { %v1344_v29 = vadd.f32 %v1343_v27, %v1221_v25 }
 0x26e   : > { %v1340_v30 = vpop.f32.mrf.mxu1 }
 0x26f   : > { %v1346_v31 = vsel %vm1345_vm4, %v1344_v29, -inf }
 0x270   : > { %1347 = vmax.xlane.f32.xlu1 %v1346_v31  ;;  %v3343_v32 = vpop.f32.mrf.mxu1 }
 0x272   : > { %v1452_v33 = vpop.f32.mrf.mxu1 }
 0x273   : > { %v1458_v34 = vmul.f32 0.35355338, %v1452_v33 }
 0x274   : > { %v3354_v35 = vpop.f32.mrf.mxu1 }
 0x275   : > { %v1459_v36 = vadd.f32 %v1458_v34, %v1221_v25 }
 0x276   : > { %v1455_v37 = vpop.f32.mrf.mxu1 }
 0x277   : > { %v1460_v38 = vsel %vm1345_vm4, %v1459_v36, -inf }
 0x278   : > { %1461 = vmax.xlane.f32.xlu0 %v1460_v38  ;;  %v3355_v39 = vpop.f32.mrf.mxu1 }
 0x27a   : > { %v1564_v40 = vpop.f32.mrf.mxu1 }
 0x27b   : > { %v1570_v41 = vmul.f32 0.35355338, %v1564_v40 }
 0x27c   : > { %v3366_v42 = vpop.f32.mrf.mxu1 }
 0x27d   : > { %v1571_v43 = vadd.f32 %v1570_v41, %v1221_v25 }
 0x27e   : > { %v1567_v44 = vpop.f32.mrf.mxu1 }
 0x27f   : > { %v1572_v45 = vsel %vm1345_vm4, %v1571_v43, -inf  ;;  %v3586_v44 = vld [vmem:[%s4615_s7 + $0x8] sm:$0xff]  }
 0x280   : > { %1573 = vmax.xlane.f32.xlu0 %v1572_v45  ;;  %v3367_v46 = vpop.f32.mrf.mxu1  ;;  %3387 = vmatpush3.bf16.msra.mxu1 %v3586_v44  ;;  %v3587_v45 = vld [vmem:[%s4615_s7] sm:$0xff]   ;;  %s4632_s7 = sld [smem:[#allocation42_spill]] }
 0x281   : > { %3388 = vmatprep.subr.bf16.mxu1 %v3734_v2 }
 0x282   : > { %v1676_v47 = vpop.f32.mrf.mxu1 }
 0x283   : > { %v1682_v48 = vmul.f32 0.35355338, %v1676_v47 }
 0x284   : > { %v3378_v49 = vpop.f32.mrf.mxu1  ;;  %3389 = vmatpush3.bf16.msra.mxu1 %v3587_v45 }
 0x285   : > { %v1683_v50 = vadd.f32 %v1682_v48, %v1221_v25  ;;  %3402 = vmatprep.subr.bf16.mxu1 %v3734_v2 }
 0x286   : > { %v1679_v51 = vpop.f32.mrf.mxu1 }
 0x287   : > { %v1684_v52 = vsel %vm1345_vm4, %v1683_v50, -inf }
 0x288   : > { %1685 = vmax.xlane.f32.xlu1 %v1684_v52  ;;  %v3379_v53 = vpop.f32.mrf.mxu1 }
 0x2f9   : > { %v1348_v54 = vpop.xlane.xlu1 %1347 }
 0x2fa   : > { %v1349_v55 = vsub.f32 %v1344_v29, %v1348_v54 }
 0x2fc   : > { %v1350_v56 = vmul.f32 1.442695, %v1349_v55 }
 0x2fe   : > { %3600 = vpow2.f32 %v1350_v56 }
 0x301   : > { %v1462_v57 = vpop.xlane.xlu0 %1461 }
 0x302   : > { %v1463_v58 = vsub.f32 %v1459_v36, %v1462_v57 }
 0x304   : > { %v1464_v59 = vmul.f32 1.442695, %v1463_v58 }
 0x306   : > { %3602 = vpow2.f32 %v1464_v59 }
 0x309   : > { %v1574_v60 = vpop.xlane.xlu0 %1573 }
 0x30a   : > { %v1575_v61 = vsub.f32 %v1571_v43, %v1574_v60 }
 0x30b   : > { %v3601_v62 = vpop.eup %3600 }
 0x30c   : > { %v1576_v63 = vmul.f32 1.442695, %v1575_v61  ;;  %v1352_v0 = vsel %vm1345_vm4, %v3601_v62, 0.0 }
 0x30d   : > { %1353 = vadd.xlane.f32.xlu0 %v1352_v0 }
 0x30e   : > { %3604 = vpow2.f32 %v1576_v63 }
 0x311   : > { %v1686_v7 = vpop.xlane.xlu1 %1685 }
 0x312   : > { %v1687_v8 = vsub.f32 %v1683_v50, %v1686_v7 }
 0x313   : > { %v3603_v1 = vpop.eup %3602 }
 0x314   : > { %v1466_v3 = vsel %vm1345_vm4, %v3603_v1, 0.0  ;;  %v1688_v9 = vmul.f32 1.442695, %v1687_v8 }
 0x315   : > { %1467 = vadd.xlane.f32.xlu1 %v1466_v3 }
 0x316   : > { %3606 = vpow2.f32 %v1688_v9 }
 0x31b   : > { %v3605_v5 = vpop.eup %3604 }
 0x31c   : > { %v1578_v6 = vsel %vm1345_vm4, %v3605_v5, 0.0 }
 0x31d   : > { %1579 = vadd.xlane.f32.xlu0 %v1578_v6 }
 0x323   : > { %v3607_v11 = vpop.eup %3606 }
 0x324   : > { %v1690_v12 = vsel %vm1345_vm4, %v3607_v11, 0.0 }
 0x326   : > { %1472 = vrot.lane.b32.xlu1 %v4124_v10, %s3743_s11  ;;  %s4616_s11 = sld [smem:[#allocation32_spill]] }
 0x333   : > { %1358 = vrot.lane.b32.xlu0 %v4124_v10, %s3744_s0 }
 0x337   : > { %1696 = vrot.lane.b32.xlu0 %v4124_v10, %s3745_s24  ;;  %s4617_s24 = scalar_lea.vmem %s4616_s11, %s3974_s3 }
 0x338   : > { %v3211_v61 = vld [vmem:[%s4617_s24] ss:$0 sm:$0xff]  ;;  %s4624_s24 = sld [smem:[#allocation36_spill]] }
 0x34a   : > { %1691 = vadd.xlane.f32.xlu1 %v1690_v12 }
 0x35b   : > { %1584 = vrot.lane.b32.xlu1 %v4124_v10, %s3746_s12  ;;  %s4618_s12 = sld [smem:[#allocation20_spill]] }
 0x396   : > { %v1354_v13 = vpop.xlane.xlu0 %1353 }
 0x397   : > { %3608 = vrcp.f32 %v1354_v13  ;;  %v3588_v13 = vld [vmem:[%s4040_s8 + $0x8] sm:$0xff]  }
 0x39e   : > { %v1468_v14 = vpop.xlane.xlu1 %1467 }
 0x39f   : > { %3610 = vrcp.f32 %v1468_v14  ;;  %v1219_v14 = vld [vmem:[%s4618_s12] sm:$0xff] }
 0x3a2   : > { %v1473_v20 = vpop.permute.xlu1 %1472 }
 0x3a3   : > { %v1478_v10 = vsel %vm1364_vm5, %v1473_v20, 0 }
 0x3a4   : > { %v3609_v15 = vpop.eup %3608 }
 0x3a5   : > { %v1356_v17 = vmul.f32 %v3609_v15, %v3601_v62  ;;  %v1927_v15 = vpack.c.bf16 %v1219_v14, %v1219_v14 }
 0x3a6   : > { %v1580_v16 = vpop.xlane.xlu0 %1579 }
 0x3a7   : > { %v1357_v21 = vpack.c.bf16 %v1356_v17, %v1356_v17  ;;  %3612 = vrcp.f32 %v1580_v16  ;;  %v3590_v16 = vld [vmem:[%s4031_s25 + $0x8] sm:$0xff]   ;;  %v3591_v17 = vld [vmem:[%s4031_s25] sm:$0xff]   ;;  %s4621_s25 = sld [smem:[#allocation34_spill]] }
 0x3aa   : > { %v1359_v18 = vpop.permute.xlu0 %1358 }
 0x3ab   : > { %v1366_v19 = vsel %vm1364_vm5, %v1359_v18, 0 }
 0x3ac   : > { %3345 = vmatpush3.bf16.msra.mxu0 %v1366_v19  ;;  %v3611_v22 = vpop.eup %3610 }
 0x3ad   : > { %3356 = vmatprep.subr.bf16.mxu0 %v3734_v2  ;;  %v1470_v23 = vmul.f32 %v3611_v22, %v3603_v1  ;;  %v3215_v22 = vld [vmem:[%s4620_s10] ss:$0 sm:$0xff]  ;;  %s4622_s12 = scalar_lea.vmem %s4621_s25, %s3974_s3  ;;  %s4625_s25 = scalar_lea.vmem %s4624_s24, %s3974_s3 }
 0x3ae   : > { %v1697_v30 = vpop.permute.xlu0 %1696 }
 0x3af   : > { %3347 = vmatmul.mubr.msk.bf16.vlgmr.msra.gmra.mxu0 %vm1360_vm6, %v1357_v21  ;;  %v1471_v24 = vpack.c.bf16 %v1470_v23, %v1470_v23  ;;  %v1702_v32 = vsel %vm1364_vm5, %v1697_v30, 0  ;;  %v3216_v23 = vld [vmem:[%s4622_s12] ss:$0 sm:$0xff]  ;;  %s4626_s12 = sld [smem:[#allocation22_spill]] }
 0x3b0   : > { %3357 = vmatpush3.bf16.msra.mxu0 %v1478_v10  ;;  %3358 = vmatprep.mubr.msk.bf16.mxu0 %vm3735_vm1, %v3734_v2 }
 0x3b1   : > { %3368 = vmatprep.subr.bf16.mxu0 %v3734_v2 }
 0x3b4   : > { %v3613_v25 = vpop.eup %3612 }
 0x3b5   : > { %v1582_v27 = vmul.f32 %v3613_v25, %v3605_v5 }
 0x3b7   : > { %3359 = vmatmul.mubr.msk.bf16.vlgmr.msra.gmra.mxu0 %vm1360_vm6, %v1471_v24  ;;  %v1583_v31 = vpack.c.bf16 %v1582_v27, %v1582_v27  ;;  %v3221_v27 = vld [vmem:[%s4623_s2] ss:$0 sm:$0xff]  ;;  %s4633_s2 = scalar_lea.vmem %s4632_s7, %s3974_s3 }
 0x3b8   : > { %3370 = vmatprep.mubr.msk.bf16.mxu0 %vm3735_vm1, %v3734_v2 }
 0x3d3   : > { %v1692_v26 = vpop.xlane.xlu1 %1691 }
 0x3d4   : > { %3614 = vrcp.f32 %v1692_v26 }
 0x3d7   : > { %v1585_v28 = vpop.permute.xlu1 %1584 }
 0x3d8   : > { %v1590_v29 = vsel %vm1364_vm5, %v1585_v28, 0 }
 0x3d9   : > { %3369 = vmatpush3.bf16.msra.mxu0 %v1590_v29 }
 0x3da   : > { %3380 = vmatprep.subr.bf16.mxu0 %v3734_v2 }
 0x3dc   : > { %3371 = vmatmul.mubr.msk.bf16.vlgmr.msra.gmra.mxu0 %vm1360_vm6, %v1583_v31 }
 0x3dd   : > { %3381 = vmatpush3.bf16.msra.mxu0 %v1702_v32  ;;  %3382 = vmatprep.mubr.msk.bf16.mxu0 %vm3735_vm1, %v3734_v2 }
 0x3de   : > { %3394 = vmatprep.subr.bf16.mxu0 %v3734_v2 }
 0x3e1   : > { %v3615_v33 = vpop.eup %3614 }
 0x3e2   : > { %v1694_v34 = vmul.f32 %v3615_v33, %v3607_v11 }
 0x3e4   : > { %v1695_v35 = vpack.c.bf16 %v1694_v34, %v1694_v34 }
 0x3e6   : > { %3383 = vmatmul.mubr.msk.bf16.vlgmr.msra.gmra.mxu0 %vm1360_vm6, %v1695_v35  ;;  %v3217_v35 = vld [vmem:[%s4625_s25] ss:$0 sm:$0xff] }
 0x3e7   : > { %3398 = vmatprep.mubr.msk.bf16.mxu0 %vm3735_vm1, %v3734_v2  ;;  %3395 = vmatpush3.bf16.msra.mxu0 %v3590_v16 }
 0x3e8   : > { %3396 = vmatprep.subr.bf16.mxu0 %v3734_v2 }
 0x3eb   : > { %3397 = vmatpush3.bf16.msra.mxu0 %v3591_v17 }
 0x3ec   : > { %3410 = vmatprep.subr.bf16.mxu0 %v3734_v2 }
 0x46f   : > { %v1402_v36 = vpop.f32.mrf.mxu0 }
 0x471   : > { %v3348_v37 = vpop.f32.mrf.mxu0 }
 0x473   : > { %v1405_v38 = vpop.f32.mrf.mxu0 }
 0x475   : > { %v3349_v39 = vpop.f32.mrf.mxu0 }
 0x477   : > { %v1514_v40 = vpop.f32.mrf.mxu0 }
 0x478   : > { %1745 = vrot.lane.b32.xlu1 %v1514_v40, %s3747_s18 }
 0x479   : > { %v3360_v41 = vpop.f32.mrf.mxu0 }
 0x47b   : > { %v1517_v42 = vpop.f32.mrf.mxu0 }
 0x47d   : > { %v3361_v43 = vpop.f32.mrf.mxu0 }
 0x49c   : > { %v1626_v46 = vpop.f32.mrf.mxu0 }
 0x49d   : > { %1749 = vrot.lane.b32.xlu0 %v1626_v46, %s3748_s19 }
 0x49e   : > { %v3372_v47 = vpop.f32.mrf.mxu0 }
 0x4a0   : > { %v1629_v48 = vpop.f32.mrf.mxu0 }
 0x4a2   : > { %v3373_v49 = vpop.f32.mrf.mxu0 }
 0x4a6   : > { %v1738_v50 = vpop.f32.mrf.mxu0 }
 0x4a7   : > { %1753 = vrot.lane.b32.xlu1 %v1738_v50, %s3749_s5 }
 0x4a8   : > { %v3384_v51 = vpop.f32.mrf.mxu0 }
 0x4a9   : > { %v1222_v51 = vld [vmem:[%s4626_s12] sm:$0x3] }
 0x4aa   : > { %v1741_v52 = vpop.f32.mrf.mxu0 }
 0x4ab   : > { %v1223_v52 = vunpack.c.l.bf16 %v1222_v51 }
 0x4ac   : > { %v3385_v53 = vpop.f32.mrf.mxu0 }
 0x4ea   : > { %v1746_v54 = vpop.permute.xlu1 %1745 }
 0x4eb   : > { %v1756_v56 = vsel %vm1296_vm3, %v1402_v36, %v1746_v54 }
 0x50f   : > { %v1750_v55 = vpop.permute.xlu0 %1749 }
 0x510   : > { %v1758_v57 = vsel %vm1757_vm7, %v1756_v56, %v1750_v55 }
 0x519   : > { %v1754_v58 = vpop.permute.xlu1 %1753 }
 0x51a   : > { %v1760_v59 = vsel %vm1759_vm8, %v1758_v57, %v1754_v58 }
 0x51b   : > { %v1761_v60 = vpack.c.bf16 %v1760_v59, %v1760_v59 }
 0x51d   : > { %3391 = vmatmul.mubr.msk.bf16.vlgmr.msra.gmra.mxu1 %vm1248_vm2, %v1761_v60 }
 0x51e   : > { %3406 = vmatprep.mubr.msk.bf16.mxu1 %vm3735_vm1, %v3734_v2  ;;  %3403 = vmatpush3.bf16.msra.mxu1 %v3588_v13 }
 0x51f   : > { %3404 = vmatprep.subr.bf16.mxu1 %v3734_v2 }
 0x5dd   : > { %v1822_v62 = vpop.f32.mrf.mxu1 }
 0x5de   : > { %v1823_v63 = vadd.f32 %v3211_v61, %v1822_v62 }
 0x5df   : > { %v3392_v0 = vpop.f32.mrf.mxu1 }
 0x5e0   : > { %v1828_v1 = vadd.f32 %v1823_v63, %v4108_v4  ;;  %v3589_v4 = vld [vmem:[%s4040_s8] sm:$0xff]  }
 0x5e1   : > { %v1825_v3 = vpop.f32.mrf.mxu1  ;;  %3405 = vmatpush3.bf16.msra.mxu1 %v3589_v4 }
 0x5e2   : > { %v1830_v5 = vsel %vm1829_vm9, %v1828_v1, 0.0  ;;  %3416 = vmatprep.subr.bf16.mxu1 %v3734_v2 }
 0x5e3   : > { %1831 = vadd.xlane.f32.xlu0 %v1830_v5  ;;  %v3393_v6 = vpop.f32.mrf.mxu1 }
 0x5e4   : > { %3407 = vmatmul.mubr.msk.bf16.vlgmr.msra.gmra.mxu1 %vm1248_vm2, %v1927_v15 }
 0x5e5   : > { %3418 = vmatprep.mubr.msk.bf16.mxu1 %vm3735_vm1, %v3734_v2 }
 0x66c   : > { %v1832_v7 = vpop.xlane.xlu0 %1831 }
 0x66d   : > { %v1834_v8 = vmul.f32 0.03125, %v1832_v7 }
 0x66f   : > { %v1835_v9 = vsub.f32 %v1828_v1, %v1834_v8 }
 0x671   : > { %v1836_v11 = vmul.f32 %v1835_v9, %v1835_v9 }
 0x673   : > { %v1837_v12 = vsel %vm1829_vm9, %v1836_v11, 0.0 }
 0x674   : > { %1838 = vadd.xlane.f32.xlu1 %v1837_v12 }
 0x6a4   : > { %v1988_v28 = vpop.f32.mrf.mxu1 }
 0x6a5   : > { %v1989_v29 = vadd.f32 %v3221_v27, %v1988_v28 }
 0x6a6   : > { %v3408_v30 = vpop.f32.mrf.mxu1 }
 0x6a7   : > { %v4250_v31 = vpack.c.bf16 %v1989_v29, %v1989_v29 }
 0x6a8   : > { %v1991_v32 = vpop.f32.mrf.mxu1 }
 0x6a9   : > { %2110 = vrot.lane.b32.xlu0 %v4250_v31, %s3736_s4  ;;  %v2000_v33 = vsel %vm1296_vm3, %v4250_v31, 0 }
 0x6aa   : > { %v3409_v34 = vpop.f32.mrf.mxu1 }
 0x6ad   : > { %2222 = vrot.lane.b32.xlu0 %v4250_v31, %s3741_s1 }
 0x6b1   : > { %2334 = vrot.lane.b32.xlu0 %v4250_v31, %s3742_s9 }
 0x6fd   : > { %v1839_v18 = vpop.xlane.xlu1 %1838 }
 0x6fe   : > { %v1840_v19 = vmul.f32 0.03125, %v1839_v18 }
 0x700   : > { %v1841_v20 = vadd.f32 1e-05, %v1840_v19 }
 0x702   : > { %3616 = vrsqrt.f32 %v1841_v20 }
 0x70f   : > { %v3617_v21 = vpop.eup %3616 }
 0x710   : > { %v1843_v10 = vmul.f32 %v3617_v21, %v1835_v9 }
 0x712   : > { %v1851_v24 = vmul.f32 %v3215_v22, %v1843_v10 }
 0x714   : > { %v4238_v25 = vadd.f32 %v3216_v23, %v1851_v24 }
 0x716   : > { %v1860_v26 = vpack.c.bf16 %v4238_v25, %v4238_v25 }
 0x718   : > { %3399 = vmatmul.mubr.msk.bf16.vlgmr.msra.gmra.mxu0 %vm1248_vm2, %v1860_v26 }
 0x719   : > { %3412 = vmatprep.mubr.msk.bf16.mxu0 %vm3735_vm1, %v3734_v2  ;;  %3411 = vmatpush3.bf16.xpose.msra.mxu0 %v2000_v33 }
 0x71a   : > { %3422 = vmatprep.subr.bf16.mxu0 %v3734_v2 }
 0x71b   : > { %v2111_v39 = vpop.permute.xlu0 %2110 }
 0x71c   : > { %v2116_v41 = vsel %vm1296_vm3, %v2111_v39, 0 }
 0x71f   : > { %v2223_v44 = vpop.permute.xlu0 %2222 }
 0x720   : > { %v2228_v46 = vsel %vm1296_vm3, %v2223_v44, 0 }
 0x723   : > { %v2335_v47 = vpop.permute.xlu0 %2334 }
 0x724   : > { %v2340_v49 = vsel %vm1296_vm3, %v2335_v47, 0 }
 0x7d8   : > { %v1921_v36 = vpop.f32.mrf.mxu0 }
 0x7d9   : > { %v1922_v37 = vadd.f32 %v3217_v35, %v1921_v36 }
 0x7da   : > { %v3400_v38 = vpop.f32.mrf.mxu0 }
 0x7db   : > { %v1994_v40 = vpack.c.bf16 %v1922_v37, %v1922_v37 }
 0x7dc   : > { %v1924_v42 = vpop.f32.mrf.mxu0 }
 0x7dd   : > { %2108 = vrot.lane.b32.xlu1 %v1994_v40, %s3736_s4  ;;  %3413 = vmatmul.mubr.msk.bf16.vlgmr.msra.gmra.mxu0 %vm1296_vm3, %v1994_v40  ;;  %s4636_s4 = sld [smem:[#allocation9_spill]] }
 0x7de   : > { %v3401_v43 = vpop.f32.mrf.mxu0  ;;  %3423 = vmatpush3.bf16.xpose.msra.mxu0 %v2116_v41  ;;  %3424 = vmatprep.mubr.msk.bf16.mxu0 %vm3735_vm1, %v3734_v2 }
 0x7df   : > { %3434 = vmatprep.subr.bf16.mxu0 %v3734_v2 }
 0x7e1   : > { %2220 = vrot.lane.b32.xlu1 %v1994_v40, %s3741_s1 }
 0x7e3   : > { %p3251_p1 = scmp.ne.s32.totalorder %s4636_s4, 1 }
 0x7e4   : > { %s4639_s1 = sld [smem:[#allocation47_spill]] (!%p3251_p1) }
 0x7e5   : > { %2332 = vrot.lane.b32.xlu1 %v1994_v40, %s3742_s9 }
 0x84f   : > { %v2109_v45 = vpop.permute.xlu1 %2108 }
 0x850   : > { %3425 = vmatmul.mubr.msk.bf16.vlgmr.msra.gmra.mxu0 %vm1296_vm3, %v2109_v45 }
 0x851   : > { %3435 = vmatpush3.bf16.xpose.msra.mxu0 %v2228_v46  ;;  %3436 = vmatprep.mubr.msk.bf16.mxu0 %vm3735_vm1, %v3734_v2 }
 0x852   : > { %3446 = vmatprep.subr.bf16.mxu0 %v3734_v2 }
 0x853   : > { %v2221_v48 = vpop.permute.xlu1 %2220 }
 0x857   : > { %v2333_v50 = vpop.permute.xlu1 %2332 }
 0x858   : > { %3437 = vmatmul.mubr.msk.bf16.vlgmr.msra.gmra.mxu0 %vm1296_vm3, %v2221_v48 }
 0x859   : > { %3447 = vmatpush3.bf16.xpose.msra.mxu0 %v2340_v49  ;;  %3448 = vmatprep.mubr.msk.bf16.mxu0 %vm3735_vm1, %v3734_v2 }
 0x85a   : > { %3458 = vmatprep.subr.bf16.mxu0 %v3734_v2 }
 0x860   : > { %3449 = vmatmul.mubr.msk.bf16.vlgmr.msra.gmra.mxu0 %vm1296_vm3, %v2333_v50 }
 0x861   : > { %3462 = vmatprep.mubr.msk.bf16.mxu0 %vm3735_vm1, %v3734_v2 }
 0x89d   : > { %v2036_v53 = vpop.f32.mrf.mxu0 }
 0x89e   : > { %v2042_v54 = vmul.f32 0.35355338, %v2036_v53 }
 0x89f   : > { %v3414_v55 = vpop.f32.mrf.mxu0 }
 0x8a0   : > { %v2043_v56 = vadd.f32 %v2042_v54, %v1223_v52 }
 0x8a1   : > { %v2039_v57 = vpop.f32.mrf.mxu0 }
 0x8a2   : > { %v2045_v58 = vsel %vm2044_vm10, %v2043_v56, -inf }
 0x8a3   : > { %2046 = vmax.xlane.f32.xlu0 %v2045_v58  ;;  %v3415_v59 = vpop.f32.mrf.mxu0 }
 0x910   : > { %v2152_v60 = vpop.f32.mrf.mxu0 }
 0x911   : > { %v2158_v61 = vmul.f32 0.35355338, %v2152_v60 }
 0x912   : > { %v3426_v62 = vpop.f32.mrf.mxu0 }
 0x913   : > { %v2159_v63 = vadd.f32 %v2158_v61, %v1223_v52 }
 0x914   : > { %v2155_v0 = vpop.f32.mrf.mxu0 }
 0x915   : > { %v2160_v1 = vsel %vm2044_vm10, %v2159_v63, -inf }
 0x916   : > { %2161 = vmax.xlane.f32.xlu1 %v2160_v1  ;;  %v3427_v3 = vpop.f32.mrf.mxu0 }
 0x918   : > { %v2264_v5 = vpop.f32.mrf.mxu0 }
 0x919   : > { %v2270_v6 = vmul.f32 0.35355338, %v2264_v5  ;;  %v3592_v5 = vld [vmem:[%s4049_s22 + $0x8] sm:$0xff]  }
 0x91a   : > { %v3438_v7 = vpop.f32.mrf.mxu0  ;;  %3459 = vmatpush3.bf16.msra.mxu0 %v3592_v5 }
 0x91b   : > { %v2271_v8 = vadd.f32 %v2270_v6, %v1223_v52  ;;  %3460 = vmatprep.subr.bf16.mxu0 %v3734_v2 }
 0x91c   : > { %v2267_v9 = vpop.f32.mrf.mxu0 }
 0x91d   : > { %v2272_v11 = vsel %vm2044_vm10, %v2271_v8, -inf }
 0x91e   : > { %2273 = vmax.xlane.f32.xlu0 %v2272_v11  ;;  %v3439_v12 = vpop.f32.mrf.mxu0 }
 0x920   : > { %v2376_v13 = vpop.f32.mrf.mxu0 }
 0x921   : > { %v2382_v4 = vmul.f32 0.35355338, %v2376_v13 }
 0x922   : > { %v3450_v14 = vpop.f32.mrf.mxu0 }
 0x923   : > { %v2383_v15 = vadd.f32 %v2382_v4, %v1223_v52 }
 0x924   : > { %v2379_v16 = vpop.f32.mrf.mxu0 }
 0x925   : > { %v2384_v17 = vsel %vm2044_vm10, %v2383_v15, -inf }
 0x926   : > { %2385 = vmax.xlane.f32.xlu0 %v2384_v17  ;;  %v3451_v18 = vpop.f32.mrf.mxu0 }
 0x92c   : > { %v2047_v19 = vpop.xlane.xlu0 %2046 }
 0x92d   : > { %v2048_v20 = vsub.f32 %v2043_v56, %v2047_v19 }
 0x92f   : > { %v2049_v21 = vmul.f32 1.442695, %v2048_v20 }
 0x931   : > { %3618 = vpow2.f32 %v2049_v21 }
 0x93e   : > { %v3619_v22 = vpop.eup %3618 }
 0x93f   : > { %v2051_v10 = vsel %vm2044_vm10, %v3619_v22, 0.0 }
 0x940   : > { %2052 = vadd.xlane.f32.xlu1 %v2051_v10 }
 0x951   : > { %2058 = vrot.lane.b32.xlu1 %v4250_v31, %s3737_s27  ;;  %s4627_s27 = scalar_lea.vmem %s4508_s15, %s3974_s3 }
 0x99f   : > { %v2162_v23 = vpop.xlane.xlu1 %2161 }
 0x9a0   : > { %v2163_v24 = vsub.f32 %v2159_v63, %v2162_v23 }
 0x9a2   : > { %v2164_v26 = vmul.f32 1.442695, %v2163_v24 }
 0x9a4   : > { %3620 = vpow2.f32 %v2164_v26  ;;  %v3233_v26 = vld [vmem:[%s4627_s27] ss:$0 sm:$0xff] }
 0x9a7   : > { %v2274_v27 = vpop.xlane.xlu0 %2273 }
 0x9a8   : > { %v2275_v28 = vsub.f32 %v2271_v8, %v2274_v27  ;;  %v3593_v8 = vld [vmem:[%s4049_s22] sm:$0xff]  }
 0x9a9   : > { %3461 = vmatpush3.bf16.msra.mxu0 %v3593_v8 }
 0x9aa   : > { %v2276_v29 = vmul.f32 1.442695, %v2275_v28  ;;  %3474 = vmatprep.subr.bf16.mxu0 %v3734_v2 }
 0x9ac   : > { %3622 = vpow2.f32 %v2276_v29 }
 0x9af   : > { %v2386_v30 = vpop.xlane.xlu0 %2385 }
 0x9b0   : > { %v2387_v32 = vsub.f32 %v2383_v15, %v2386_v30 }
 0x9b1   : > { %v3621_v33 = vpop.eup %3620 }
 0x9b2   : > { %v2388_v34 = vmul.f32 1.442695, %v2387_v32  ;;  %v2166_v35 = vsel %vm2044_vm10, %v3621_v33, 0.0 }
 0x9b3   : > { %2167 = vadd.xlane.f32.xlu0 %v2166_v35 }
 0x9b4   : > { %3624 = vpow2.f32 %v2388_v34 }
 0x9b9   : > { %v3623_v36 = vpop.eup %3622 }
 0x9ba   : > { %v2278_v37 = vsel %vm2044_vm10, %v3623_v36, 0.0 }
 0x9bb   : > { %2279 = vadd.xlane.f32.xlu1 %v2278_v37 }
 0x9c1   : > { %v3625_v38 = vpop.eup %3624 }
 0x9c2   : > { %v2390_v39 = vsel %vm2044_vm10, %v3625_v38, 0.0 }
 0x9c3   : > { %2391 = vadd.xlane.f32.xlu0 %v2390_v39 }
 0x9c9   : > { %v2053_v40 = vpop.xlane.xlu1 %2052 }
 0x9ca   : > { %3626 = vrcp.f32 %v2053_v40  ;;  %v3594_v40 = vld [vmem:[%s4066_s20 + $0x8] sm:$0xff]  }
 0x9cc   : > { %2284 = vrot.lane.b32.xlu1 %v4250_v31, %s3738_s30  ;;  %s4637_s30 = sld [smem:[#allocation46_spill]] (!%p3251_p1) }
 0x9cd   : > { %v2059_v41 = vpop.permute.xlu1 %2058 }
 0x9ce   : > { %v2065_v42 = vsel %vm2063_vm11, %v2059_v41, 0  ;;  %v3595_v41 = vld [vmem:[%s4066_s20] sm:$0xff]  }
 0x9cf   : > { %3417 = vmatpush3.bf16.msra.mxu1 %v2065_v42  ;;  %v3597_v42 = vld [vmem:[%s4080_s14 + $0x10] sm:$0xff]  }
 0x9d0   : > { %2396 = vrot.lane.b32.xlu1 %v4250_v31, %s3740_s28  ;;  %3428 = vmatprep.subr.bf16.mxu1 %v3734_v2 }
 0x9d7   : > { %v3627_v43 = vpop.eup %3626 }
 0x9d8   : > { %v4304_v44 = vmul.f32 %v3627_v43, %v3619_v22 }
 0x9d9   : > { %2172 = vrot.lane.b32.xlu0 %v4250_v31, %s3739_s23  ;;  %s4628_s23 = sld [smem:[#allocation39_spill]] }
 0x9da   : > { %v2056_v45 = vpack.c.bf16 %v4304_v44, %v4304_v44 }
 0x9dc   : > { %3419 = vmatmul.mubr.msk.bf16.vlgmr.msra.gmra.mxu1 %vm1296_vm3, %v2056_v45 }
 0x9dd   : > { %3430 = vmatprep.mubr.msk.bf16.mxu1 %vm3735_vm1, %v3734_v2 }
 0x9df   : > { %s4629_s28 = scalar_lea.vmem %s4628_s23, %s3974_s3  ;;  %s4638_s23 = smov (!%p3251_p1), %s4637_s30 }
 0xa3c   : > { %v2168_v46 = vpop.xlane.xlu0 %2167 }
 0xa3d   : > { %3628 = vrcp.f32 %v2168_v46 }
 0xa44   : > { %v2280_v47 = vpop.xlane.xlu1 %2279 }
 0xa45   : > { %3630 = vrcp.f32 %v2280_v47 }
 0xa48   : > { %v2285_v52 = vpop.permute.xlu1 %2284 }
 0xa49   : > { %v2290_v55 = vsel %vm2063_vm11, %v2285_v52, 0 }
 0xa4a   : > { %v3629_v48 = vpop.eup %3628 }
 0xa4b   : > { %v4313_v50 = vmul.f32 %v3629_v48, %v3621_v33  ;;  %v3237_v48 = vld [vmem:[%s4629_s28] ss:$0 sm:$0xff] }
 0xa4c   : > { %v2392_v49 = vpop.xlane.xlu0 %2391  ;;  %v2397_v57 = vpop.permute.xlu1 %2396 }
 0xa4d   : > { %3632 = vrcp.f32 %v2392_v49  ;;  %v2171_v53 = vpack.c.bf16 %v4313_v50, %v4313_v50  ;;  %v2402_v60 = vsel %vm2063_vm11, %v2397_v57, 0  ;;  %v3239_v57 = vld [vmem:[%s4633_s2] ss:$0 sm:$0xff] }
 0xa50   : > { %v2173_v51 = vpop.permute.xlu0 %2172 }
 0xa51   : > { %v2178_v31 = vsel %vm2063_vm11, %v2173_v51, 0 }
 0xa52   : > { %3429 = vmatpush3.bf16.msra.mxu1 %v2178_v31  ;;  %v3631_v54 = vpop.eup %3630 }
 0xa53   : > { %3440 = vmatprep.subr.bf16.mxu1 %v3734_v2  ;;  %v4324_v56 = vmul.f32 %v3631_v54, %v3623_v36  ;;  %v3598_v54 = vld [vmem:[%s4080_s14 + $0x8] sm:$0xff]  }
 0xa55   : > { %3431 = vmatmul.mubr.msk.bf16.vlgmr.msra.gmra.mxu1 %vm1296_vm3, %v2171_v53  ;;  %v2283_v58 = vpack.c.bf16 %v4324_v56, %v4324_v56 }
 0xa56   : > { %3441 = vmatpush3.bf16.msra.mxu1 %v2290_v55  ;;  %3442 = vmatprep.mubr.msk.bf16.mxu1 %vm3735_vm1, %v3734_v2  ;;  %v3599_v55 = vld [vmem:[%s4080_s14] sm:$0xff]  }
 0xa57   : > { %3452 = vmatprep.subr.bf16.mxu1 %v3734_v2 }
 0xa5a   : > { %v3633_v59 = vpop.eup %3632 }
 0xa5b   : > { %v4332_v61 = vmul.f32 %v3633_v59, %v3625_v38 }
 0xa5d   : > { %3443 = vmatmul.mubr.msk.bf16.vlgmr.msra.gmra.mxu1 %vm1296_vm3, %v2283_v58  ;;  %v2395_v62 = vpack.c.bf16 %v4332_v61, %v4332_v61 }
 0xa5e   : > { %3453 = vmatpush3.bf16.msra.mxu1 %v2402_v60  ;;  %3454 = vmatprep.mubr.msk.bf16.mxu1 %vm3735_vm1, %v3734_v2 }
 0xa5f   : > { %3466 = vmatprep.subr.bf16.mxu1 %v3734_v2 }
 0xa65   : > { %3455 = vmatmul.mubr.msk.bf16.vlgmr.msra.gmra.mxu1 %vm1296_vm3, %v2395_v62 }
 0xa66   : > { %3470 = vmatprep.mubr.msk.bf16.mxu1 %vm3735_vm1, %v3734_v2  ;;  %3467 = vmatpush3.bf16.msra.mxu1 %v3594_v40 }
 0xa67   : > { %3468 = vmatprep.subr.bf16.mxu1 %v3734_v2 }
 0xa6a   : > { %3469 = vmatpush3.bf16.msra.mxu1 %v3595_v41 }
 0xa9c   : > { %v2101_v63 = vpop.f32.mrf.mxu1 }
 0xa9e   : > { %v3420_v0 = vpop.f32.mrf.mxu1 }
 0xaa0   : > { %v2104_v1 = vpop.f32.mrf.mxu1 }
 0xaa2   : > { %v3421_v3 = vpop.f32.mrf.mxu1 }
 0xb15   : > { %v2214_v6 = vpop.f32.mrf.mxu1 }
 0xb16   : > { %2445 = vrot.lane.b32.xlu0 %v2214_v6, %s3747_s18  ;;  %s4630_s18 = sld [smem:[#allocation40_spill]] }
 0xb17   : > { %v3432_v7 = vpop.f32.mrf.mxu1 }
 0xb19   : > { %v2217_v9 = vpop.f32.mrf.mxu1 }
 0xb1b   : > { %v3433_v11 = vpop.f32.mrf.mxu1 }
 0xb1d   : > { %v2326_v12 = vpop.f32.mrf.mxu1 }
 0xb1e   : > { %2449 = vrot.lane.b32.xlu1 %v2326_v12, %s3748_s19  ;;  %s4631_s19 = scalar_lea.vmem %s4630_s18, %s3974_s3 }
 0xb1f   : > { %v3444_v13 = vpop.f32.mrf.mxu1  ;;  %v3238_v51 = vld [vmem:[%s4631_s19] ss:$0 sm:$0xff] }
 0xb21   : > { %v2329_v4 = vpop.f32.mrf.mxu1 }
 0xb23   : > { %v3445_v14 = vpop.f32.mrf.mxu1 }
 0xb25   : > { %v2438_v15 = vpop.f32.mrf.mxu1 }
 0xb26   : > { %2453 = vrot.lane.b32.xlu0 %v2438_v15, %s3749_s5 }
 0xb27   : > { %v3456_v16 = vpop.f32.mrf.mxu1 }
 0xb29   : > { %v2441_v17 = vpop.f32.mrf.mxu1 }
 0xb2b   : > { %v3457_v18 = vpop.f32.mrf.mxu1 }
 0xb88   : > { %v2446_v19 = vpop.permute.xlu0 %2445 }
 0xb89   : > { %v2456_v21 = vsel %vm1296_vm3, %v2101_v63, %v2446_v19 }
 0xb90   : > { %v2450_v20 = vpop.permute.xlu1 %2449 }
 0xb91   : > { %v2457_v22 = vsel %vm1757_vm7, %v2456_v21, %v2450_v20  ;;  %v3249_v20 = vld [vmem:[%s1202_s29] ss:$0 sm:$0xff] }
 0xb98   : > { %v2454_v10 = vpop.permute.xlu0 %2453 }
 0xb99   : > { %v2458_v23 = vsel %vm1759_vm8, %v2457_v22, %v2454_v10  ;;  %v3250_v22 = vld [vmem:[%s1205_s17] ss:$0 sm:$0xff] }
 0xb9a   : > { %v2459_v24 = vpack.c.bf16 %v2458_v23, %v2458_v23 }
 0xb9c   : > { %3463 = vmatmul.mubr.msk.bf16.vlgmr.msra.gmra.mxu0 %vm1248_vm2, %v2459_v24 }
 0xb9d   : > { %3482 = vmatprep.mubr.msk.bf16.mxu0 %vm3735_vm1, %v3734_v2 }
 0xc5c   : > { %v2520_v27 = vpop.f32.mrf.mxu0 }
 0xc5d   : > { %v2521_v28 = vadd.f32 %v3233_v26, %v2520_v27 }
 0xc5e   : > { %v3464_v29 = vpop.f32.mrf.mxu0 }
 0xc5f   : > { %v2526_v30 = vadd.f32 %v2521_v28, %v4238_v25  ;;  %v3596_v25 = vld [vmem:[%s4080_s14 + $0x18] sm:$0xff]  }
 0xc60   : > { %v2523_v32 = vpop.f32.mrf.mxu0  ;;  %3475 = vmatpush3.bf16.msra.mxu0 %v3596_v25 }
 0xc61   : > { %v2527_v33 = vsel %vm1829_vm9, %v2526_v30, 0.0  ;;  %3476 = vmatprep.subr.bf16.mxu0 %v3734_v2 }
 0xc62   : > { %2528 = vadd.xlane.f32.xlu1 %v2527_v33  ;;  %v3465_v34 = vpop.f32.mrf.mxu0 }
 0xc64   : > { %3477 = vmatpush3.bf16.msra.mxu0 %v3597_v42 }
 0xc65   : > { %3478 = vmatprep.subr.bf16.mxu0 %v3734_v2 }
 0xc68   : > { %3479 = vmatpush3.bf16.msra.mxu0 %v3598_v54 }
 0xc69   : > { %3480 = vmatprep.subr.bf16.mxu0 %v3734_v2  ;;  %v3243_v2 = vld [vmem:[%s1199_s26] ss:$0 sm:$0xff] }
 0xc6c   : > { %3481 = vmatpush3.bf16.msra.mxu0 %v3599_v55 }
 0xceb   : > { %v2529_v35 = vpop.xlane.xlu1 %2528 }
 0xcec   : > { %v2530_v36 = vmul.f32 0.03125, %v2529_v35 }
 0xcee   : > { %v2531_v37 = vsub.f32 %v2526_v30, %v2530_v36 }
 0xcf0   : > { %v2532_v38 = vmul.f32 %v2531_v37, %v2531_v37 }
 0xcf2   : > { %v2533_v39 = vsel %vm1829_vm9, %v2532_v38, 0.0 }
 0xcf3   : > { %2534 = vadd.xlane.f32.xlu0 %v2533_v39 }
 0xd7c   : > { %v2535_v43 = vpop.xlane.xlu0 %2534 }
 0xd7d   : > { %v2536_v45 = vmul.f32 0.03125, %v2535_v43 }
 0xd7f   : > { %v2537_v46 = vadd.f32 1e-05, %v2536_v45 }
 0xd81   : > { %3634 = vrsqrt.f32 %v2537_v46 }
 0xd8e   : > { %v3635_v47 = vpop.eup %3634 }
 0xd8f   : > { %v2539_v49 = vmul.f32 %v3635_v47, %v2531_v37 }
 0xd91   : > { %v2547_v31 = vmul.f32 %v3237_v48, %v2539_v49 }
 0xd93   : > { %v2555_v52 = vadd.f32 %v3238_v51, %v2547_v31 }
 0xd95   : > { %v2556_v53 = vpack.c.bf16 %v2555_v52, %v2555_v52 }
 0xd97   : > { %3471 = vmatmul.mubr.msk.bf16.vlgmr.msra.gmra.mxu1 %vm1248_vm2, %v2556_v53 }
 0xe57   : > { %v2617_v58 = vpop.f32.mrf.mxu1 }
 0xe58   : > { %v2618_v59 = vadd.f32 %v3239_v57, %v2617_v58 }
 0xe59   : > { %v3472_v60 = vpop.f32.mrf.mxu1 }
 0xe5a   : > { %v2623_v62 = vmax.f32 %v2618_v59, 0.0 }
 0xe5b   : > { %v2620_v63 = vpop.f32.mrf.mxu1 }
 0xe5c   : > { %v2624_v0 = vpack.c.bf16 %v2623_v62, %v2623_v62 }
 0xe5d   : > { %v3473_v1 = vpop.f32.mrf.mxu1 }
 0xe5e   : > { %3483 = vmatmul.mubr.msk.bf16.vlgmr.msra.gmra.mxu0 %vm2664_vm12, %v2624_v0 }
 0xf1e   : > { %v2702_v3 = vpop.f32.mrf.mxu0 }
 0xf1f   : > { %v2703_v5 = vadd.f32 %v3243_v2, %v2702_v3 }
 0xf20   : > { %v3484_v6 = vpop.f32.mrf.mxu0 }
 0xf21   : > { %v2708_v7 = vadd.f32 %v2703_v5, %v2555_v52 }
 0xf22   : > { %v2705_v8 = vpop.f32.mrf.mxu0 }
 0xf23   : > { %v2709_v9 = vsel %vm1829_vm9, %v2708_v7, 0.0 }
 0xf24   : > { %2710 = vadd.xlane.f32.xlu0 %v2709_v9  ;;  %v3485_v11 = vpop.f32.mrf.mxu0 }
 0xfad   : > { %v2711_v12 = vpop.xlane.xlu0 %2710 }
 0xfae   : > { %v2712_v13 = vmul.f32 0.03125, %v2711_v12 }
 0xfb0   : > { %v2713_v4 = vsub.f32 %v2708_v7, %v2712_v13 }
 0xfb2   : > { %v2714_v14 = vmul.f32 %v2713_v4, %v2713_v4 }
 0xfb4   : > { %v2715_v15 = vsel %vm1829_vm9, %v2714_v14, 0.0 }
 0xfb5   : > { %2716 = vadd.xlane.f32.xlu1 %v2715_v15 }
0x103e   : > { %v2717_v16 = vpop.xlane.xlu1 %2716 }
0x103f   : > { %v2718_v17 = vmul.f32 0.03125, %v2717_v16 }
0x1041   : > { %v2719_v18 = vadd.f32 1e-05, %v2718_v17 }
0x1043   : > { %3636 = vrsqrt.f32 %v2719_v18 }
0x1050   : > { %v3637_v19 = vpop.eup %3636 }
0x1051   : > { %v2721_v21 = vmul.f32 %v3637_v19, %v2713_v4 }
0x1053   : > { %v2729_v10 = vmul.f32 %v3249_v20, %v2721_v21  ;;  %2742 = sbr.rel (%p3251_p1) target bundleno = 4392 (0x1128), region = 132 }
0x1055   : > { %v2737_v23 = vadd.f32 %v3250_v22, %v2729_v10 }
0x1057   : > { %2738 = vst.msk [vmem:[#allocation2] sm:$0xf] %vm1829_vm9, %v2737_v23 }
0x1058   : > { %v3638_v24 = vld [vmem:[%s4637_s30 + $0x8] sm:$0xff]   ;;  %2811 = vst.msk [vmem:[%s4098_s6] sm:$0xf] %vm2044_vm10, %v4304_v44  ;;  %3256 = vst.msk [vmem:[%s4098_s6 + $0x4] sm:$0xf] %vm2044_vm10, %v4313_v50  ;;  %v3750_v26 = vmov 0.0   ;;  %v2743_v44 = vpack.c.bf16 %v2737_v23, %v2737_v23 }
0x1059   : > { %3257 = vst.msk [vmem:[%s4098_s6 + $0x8] sm:$0xf] %vm2044_vm10, %v4324_v56  ;;  %3258 = vst.msk [vmem:[%s4098_s6 + $0xc] sm:$0xf] %vm2044_vm10, %v4332_v61  ;;  %3486 = vmatprep.subr.bf16.mxu0 %v3750_v26  ;;  %v3639_v27 = vld [vmem:[%s4638_s23] sm:$0xff]   ;;  %vm3751_vm13 = vmmov 0  }
0x105a   : > { %3487 = vmatpush3.bf16.msra.mxu0 %v3638_v24  ;;  %3490 = vmatprep.mubr.msk.bf16.mxu0 %vm3751_vm13, %v3750_v26  ;;  %v3252_v50 = vld [vmem:[%s4639_s1] ss:$0 sm:$0xff] }
0x105b   : > { %3488 = vmatprep.subr.bf16.mxu0 %v3750_v26 }
0x105e   : > { %3489 = vmatpush3.bf16.msra.mxu0 %v3639_v27 }
0x1061   : > { %3491 = vmatmul.mubr.msk.bf16.vlgmr.msra.gmra.mxu0 %vm1248_vm2, %v2743_v44 }
0x1121   : > { %v2804_v56 = vpop.f32.mrf.mxu0 }
0x1122   : > { %v2805_v61 = vadd.f32 %v3252_v50, %v2804_v56 }
0x1123   : > { %v3492_v28 = vpop.f32.mrf.mxu0 }
0x1124   : > { %2810 = vst [vmem:[%s4095_s16] sm:$0xf] %v2805_v61 }
0x1125   : > { %v2807_v29 = vpop.f32.mrf.mxu0 }
0x1127   : > { %v3493_v30 = vpop.f32.mrf.mxu0 }
0x1128 PF: > { %s4640_s9 = sld [smem:[#allocation10_spill]]  ;;  %s2839_s11 = sshll.u32 %s4098_s6, 4  ;;  %s4436_s11 = int_to_ptr.vmem [resolvable:$true] %s2839_s11 }
0x1129   : > { %s4641_s18 = sld [smem:[#allocation7_spill]]  ;;  %s3640_s26 = scalar_lea.vmem %s4436_s11, 256 }
0x112a   : > { %s4643_s2 = sld [smem:[#allocation49_spill]]  ;;  %p3641_p2 = scmp.ne.s32.totalorder %s4436_s11, %s3640_s26 }
0x112b   : > { %s3752_s24 = smov [#allocation3]  }
0x112c   : > { %p3642_p4 = pnand %p3641_p2, %p3943_p3  ;;  %s3644_s25 = sshll.u32 %s3752_s24, 4  ;;  %s3645_s25 = int_to_ptr.vmem [resolvable:$false] %s3644_s25 }
0x112d   : > { %s3646_s12 = scalar_lea.vmem %s3645_s25, 512  ;;  %p3647_p6 = scmp.lt.s32.totalorder %s4436_s11, %s3645_s25 }
0x112e   : > { %s3271_s5 = sshll.u32 %s4640_s9, 8  ;;  %p3643_p5 = pneg %p3642_p4 }
0x112f   : > { %s4644_s14 = sand.u32 1, %s4641_s18   ;;  %p3648_p7 = scmp.lt.s32.totalorder %s3646_s12, %s3640_s26 }
0x1130   : > { %s4433_s10 = scalar_lea.hbm %s4643_s2, %s3271_s5  ;;  %s4440_s16 = scalar_lea.sflag [#allocation4], %s4644_s14 }
0x1131   : > { %p3649_p8 = por %p3648_p7, %p3647_p6 }
0x1133   : > { %p3650_p10 = pnand %p3649_p8, %p3643_p5 }
0x1135   : > { %3653 = shalt.err (!%p3650_p10)
}
0x1136   : > { %s3654_s6 = scalar_lea.hbm %s4433_s10, 256  ;;  %s3658_s27 = scalar_lea.hbm %s4643_s2, 512 }
0x1137   : > { %p3655_p11 = scmp.ne.s32.totalorder %s4433_s10, %s3654_s6  ;;  %p3659_p0 = scmp.lt.s32.totalorder %s4433_s10, %s4643_s2 }
0x1138   : > { %p3660_p1 = scmp.lt.s32.totalorder %s3658_s27, %s3654_s6 }
0x1139   : > { %p3656_p12 = pnand %p3655_p11, %p3943_p3 }
0x113a   : > { %p3661_p2 = por %p3660_p1, %p3659_p0 }
0x113b   : > { %p3657_p13 = pneg %p3656_p12 }
0x113d   : > { %p3662_p4 = pnand %p3661_p2, %p3657_p13 }
0x113f   : > { %3665 = shalt.err (!%p3662_p4)
}
0x1140   : > { %s3753_s17 = smov 4  }
0x1141   : > { %3494 = dma.vmem_to_hbm [thread:$0]  (%p3943_p3), %s4436_s11, 256, %s4433_s10, %s4440_s16, %s3744_s0, %s3744_s0, %s3753_s17  }
0x1142 PF: > { %s4645_s3 = sld [smem:[#allocation13_spill]] }
0x1143   : > { %s4646_s29 = sld [smem:[#allocation6_spill]] }
0x1148   : > { %p3500_p5 = scmp.ge.s32.totalorder %s4645_s3, 2 }
0x1149   : > { %s2861_s1 = sand.u32 1, %s4646_s29  }
0x114a   : > { %p3497_p6 = pnand %p3500_p5, %p3953_p9  ;;  %s2862_s9 = scalar_lea.sflag [#allocation4], %s2861_s1 }
0x114c   : > { %p3498_p7 = pneg %p3497_p6 }
0x114e   : > { %3699 = dma.done.wait (%p3498_p7), %s2862_s9, 256  }
0x114f   : > { %3701 = vsyncadd (%p3498_p7), %s2862_s9, 4294967040  ;;  %s41_s0 = sadd.s32 1, %s4645_s3   ;;  %s4648_s7 = sld [smem:[#allocation7_spill]] }
0x1150   : > { %p38_p8 = scmp.ge.s32.totalorder %s41_s0, 6   ;;  %s4649_s4 = sld [smem:[#allocation8_spill]] }
0x1151   : > { %s4650_s8 = sld [smem:[#allocation18_spill]] }
0x1152   : > { %s4651_s30 = sld [smem:[#allocation11_spill]]  ;;  %40 = sbr.rel (!%p38_p8) target bundleno = 31 (0x1f), region = 251 }
0x1153   : > { %s4652_s9 = sld [smem:[#allocation12_spill]] }
0x1154   : > { %s4653_s5 = sld [smem:[#allocation14_spill]] }
0x1155   : > { %s4654_s28 = sld [smem:[#allocation16_spill]] }
0x1157   :  { %2867 = vsyncpa [#allocation4], 1 }
0x1158   :  { %2869 = vsyncpa [#allocation4 + $0x1], 1 }

</bundles_post_ra>
